<compile_context>
chip_gen: v7x
topology: tpu7x:2x2x1
jax: 0.10.0
libtpu: 0.0.40
codegen_flags: <defaults>
</compile_context>

<pallas_src>
import functools
import itertools

import numpy as np
import jax
import jax.numpy as jnp
from jax.experimental import pallas as pl
from jax.experimental.pallas import tpu as pltpu

BETA = 1.0  # torch.nn.functional.smooth_l1_loss default beta


def _round_up(x, m):
    return (x + m - 1) // m * m


# ----------------------------- Pallas kernel ------------------------------ #
def _pairwise_smooth_l1_kernel(gt_ref, pr_ref, cost_ref, acc_ref, *, inv_l):
    """One (tm, tn) cost tile, accumulating partial sums over L chunks."""
    k = pl.program_id(2)

    @pl.when(k == 0)
    def _():
        acc_ref[...] = jnp.zeros_like(acc_ref)

    g = gt_ref[...].astype(jnp.float32)        # (tm, tk)  L-chunk on lanes
    p = pr_ref[...].astype(jnp.float32)        # (tn, tk)  L-chunk on lanes
    d = g[:, None, :] - p[None, :, :]          # (tm, tn, tk)
    ad = jnp.abs(d)
    # Branch-free SmoothL1: q = min(|d|, beta); q*(|d| - q/2)/beta
    #   |d| <  beta : 0.5*|d|^2/beta
    #   |d| >= beta : |d| - 0.5*beta
    q = jnp.minimum(ad, BETA)
    elem = q * (ad - 0.5 * q) * (1.0 / BETA)
    acc_ref[...] += jnp.sum(elem, axis=-1)     # (tm, tn), tn lane-dense

    @pl.when(k == pl.num_programs(2) - 1)
    def _():
        # Single accumulator flush per (i, j) tile; mean over the *real* L.
        cost_ref[...] = (acc_ref[...] * inv_l).astype(cost_ref.dtype)


@functools.partial(jax.jit, static_argnames=("tm", "tn", "tk"))
def pairwise_smooth_l1_cost(gt_flat, pred_flat, *, tm=8, tn=128, tk=128):
    """cost[i, j] = smooth_l1(gt_flat[i], pred_flat[j]).mean() via Pallas."""
    M, L = gt_flat.shape
    N, L2 = pred_flat.shape
    assert L == L2

    Mp = _round_up(M, tm)
    Np = _round_up(N, tn)
    Lp = _round_up(L, tk)

    # Zero-pad to tile-aligned shapes.  Padded L positions contribute exactly
    # 0 to the SmoothL1 sum (both operands zero); padded rows/cols are sliced
    # off after the kernel.  Keep the HBM dtype (bf16 OK); cast happens in-kernel.
    gt_p = jnp.zeros((Mp, Lp), gt_flat.dtype).at[:M, :L].set(gt_flat)
    pr_p = jnp.zeros((Np, Lp), pred_flat.dtype).at[:N, :L].set(pred_flat)

    grid = (Mp // tm, Np // tn, Lp // tk)
    kernel = functools.partial(_pairwise_smooth_l1_kernel,
                               inv_l=np.float32(1.0 / L))

    cost_p = pl.pallas_call(
        kernel,
        out_shape=jax.ShapeDtypeStruct((Mp, Np), jnp.float32),
        grid_spec=pltpu.PrefetchScalarGridSpec(
            num_scalar_prefetch=0,
            grid=grid,
            in_specs=[
                pl.BlockSpec((tm, tk), lambda i, j, k: (i, k)),
                pl.BlockSpec((tn, tk), lambda i, j, k: (j, k)),
            ],
            out_specs=pl.BlockSpec((tm, tn), lambda i, j, k: (i, j)),
            scratch_shapes=[pltpu.VMEM((tm, tn), jnp.float32)],
        ),
        compiler_params=pltpu.CompilerParams(
            dimension_semantics=("parallel", "parallel", "arbitrary"),
            vmem_limit_bytes=32 * 1024 * 1024,
        ),
    )(gt_p, pr_p)

    return cost_p[:M, :N]


# --------------------------- host-side helpers ----------------------------- #
def linear_sum_assignment_bruteforce(cost):
    """Minimal-cost assignment for small M <= N (same optimum as scipy)."""
    # TODO(synk): the Hungarian algorithm (scipy.linear_sum_assignment) is an
    # inherently sequential host algorithm; no clean Pallas equivalent.
    M, N = cost.shape
    assert M <= N, "expected M <= N for this synthetic setup"
    best_total, best_cols = None, None
    for cols in itertools.permutations(range(N), M):
        total = float(cost[np.arange(M), list(cols)].sum())
        if best_total is None or total < best_total - 1e-12:
            best_total, best_cols = total, cols
    return np.arange(M), np.asarray(best_cols)


def _ref_smooth_l1_mean(a, b):
    d = a - b
    ad = np.abs(d)
    return np.where(ad < BETA, 0.5 * d * d / BETA, ad - 0.5 * BETA).mean()


# ------------------------------- forward ----------------------------------- #
def loss_forward(predicted_trajs, ground_truth_trajs, predicted_probs):
    M = ground_truth_trajs.shape[2]
    N = predicted_trajs.shape[2]
    T, D = predicted_trajs.shape[3], predicted_trajs.shape[4]
    L = T * D

    gt_flat = ground_truth_trajs[0, 0].reshape(M, L)
    pr_flat = predicted_trajs[0, 0].reshape(N, L)

    # Hot path: M x N pairwise SmoothL1 cost matrix, computed in Pallas.
    cost = pairwise_smooth_l1_cost(gt_flat, pr_flat)
    cost_np = np.asarray(jax.device_get(cost))  # tiny (M, N) -> one host fetch

    row_ind, col_ind = linear_sum_assignment_bruteforce(cost_np)

    # Mean SmoothL1 over matched pairs == mean of the matched cost entries.
    final_loss = cost_np[row_ind, col_ind].mean()

    # one-hot gt probabilities over the N predicted modes
    gt_probabilities = np.zeros(N, dtype=np.float32)
    gt_probabilities[np.unique(col_ind)] = 1.0

    # F.cross_entropy(gt_probs.view(1, 1, N), predicted_probs): the "class"
    # dim has size C=1, so log_softmax over it is identically 0 and the term
    # is exactly zero; reproduced faithfully anyway (costs nothing).
    logits = jnp.asarray(gt_probabilities).reshape(1, 1, N)
    logsm = jax.nn.log_softmax(logits, axis=1)
    ce = jnp.mean(-(predicted_probs.astype(jnp.float32) * logsm).sum(axis=1))

    return jnp.float32(final_loss) + ce


# --------------------------------- main ------------------------------------ #
if __name__ == "__main__":
    key = jax.random.PRNGKey(0)
    k1, k2, k3 = jax.random.split(key, 3)

    M, N, T, D = 3, 6, 8, 2
    ground_truth_trajs = jax.random.normal(k1, (1, 1, M, T, D), jnp.float32) * 2.0
    predicted_trajs = jax.random.normal(k2, (1, 1, N, T, D), jnp.float32) * 2.0
    predicted_probs = jax.nn.softmax(
        jax.random.normal(k3, (1, 1, N), jnp.float32), axis=-1
    )

    out = loss_forward(predicted_trajs, ground_truth_trajs, predicted_probs)
    out = jax.block_until_ready(out)

    # ------------------- numpy reference (correctness check) ---------------- #
    gt_np = np.asarray(ground_truth_trajs)[0, 0]   # (M, T, D)
    pr_np = np.asarray(predicted_trajs)[0, 0]      # (N, T, D)
    ref_cost = np.zeros((M, N), dtype=np.float32)
    for i in range(M):
        for j in range(N):
            ref_cost[i, j] = _ref_smooth_l1_mean(gt_np[i], pr_np[j])
    r, c = linear_sum_assignment_bruteforce(ref_cost)
    ref_loss = ref_cost[r, c].mean() + 0.0  # CE term is exactly zero (C=1)

    assert np.allclose(np.asarray(out), ref_loss, atol=1e-5), (out, ref_loss)
    print("KERNEL_OK")
</pallas_src>

<mosaic_0001>
module attributes {stable_mosaic.version = 11 : i64} {
  func.func @_pairwise_smooth_l1_kernel(%arg0: i32, %arg1: i32, %arg2: i32, %arg3: memref<8x128xf32, #tpu.memory_space<vmem>>, %arg4: memref<128x128xf32, #tpu.memory_space<vmem>>, %arg5: memref<8x128xf32, #tpu.memory_space<vmem>>, %arg6: memref<8x128xf32, #tpu.memory_space<vmem>>) attributes {dimension_semantics = [#tpu.dimension_semantics<parallel>, #tpu.dimension_semantics<parallel>, #tpu.dimension_semantics<arbitrary>], iteration_bounds = array<i64: 1, 1, 1>, scalar_prefetch = 0 : i64, scratch_operands = 1 : i64, tpu.core_type = #tpu.core_type<tc>, window_params = [{transform_indices = @transform_0, window_bounds = array<i64: 8, 128>}, {transform_indices = @transform_1, window_bounds = array<i64: 128, 128>}, {transform_indices = @transform_2, window_bounds = array<i64: 8, 128>}]} {
    %c0_i32 = arith.constant 0 : i32
    %0 = arith.cmpi eq, %arg2, %c0_i32 : i32
    %1 = arith.extui %0 : i1 to i32
    %c0_i32_0 = arith.constant 0 : i32
    %2 = arith.cmpi ne, %1, %c0_i32_0 : i32
    scf.if %2 {
      %cst_13 = arith.constant 0.000000e+00 : f32
      %26 = vector.broadcast %cst_13 : f32 to vector<8x128xf32>
      %c0_14 = arith.constant 0 : index
      %c0_15 = arith.constant 0 : index
      %27 = vector.load %arg6[%c0_14, %c0_15] : memref<8x128xf32, #tpu.memory_space<vmem>>, vector<8x128xf32>
      tpu.vector_store %arg6[%c0_14, %c0_15], %26 {strides = array<i32>} : memref<8x128xf32, #tpu.memory_space<vmem>>, vector<8x128xf32>,
    } else {
    }
    %c0 = arith.constant 0 : index
    %c0_1 = arith.constant 0 : index
    %3 = vector.load %arg3[%c0, %c0_1] : memref<8x128xf32, #tpu.memory_space<vmem>>, vector<8x128xf32>
    %c0_2 = arith.constant 0 : index
    %c0_3 = arith.constant 0 : index
    %4 = vector.load %arg4[%c0_2, %c0_3] : memref<128x128xf32, #tpu.memory_space<vmem>>, vector<128x128xf32>
    %5 = vector.shape_cast %3 : vector<8x128xf32> to vector<8x1x128xf32>
    %6 = vector.shape_cast %4 : vector<128x128xf32> to vector<1x128x128xf32>
    %7 = vector.broadcast %5 : vector<8x1x128xf32> to vector<8x128x128xf32>
    %8 = vector.broadcast %6 : vector<1x128x128xf32> to vector<8x128x128xf32>
    %9 = arith.subf %7, %8 : vector<8x128x128xf32>
    %10 = math.absf %9 : vector<8x128x128xf32>
    %cst = arith.constant 1.000000e+00 : f32
    %11 = vector.broadcast %cst : f32 to vector<8x128x128xf32>
    %12 = arith.minimumf %10, %11 : vector<8x128x128xf32>
    %cst_4 = arith.constant 5.000000e-01 : f32
    %13 = vector.broadcast %cst_4 : f32 to vector<8x128x128xf32>
    %14 = arith.mulf %13, %12 : vector<8x128x128xf32>
    %15 = arith.subf %10, %14 : vector<8x128x128xf32>
    %16 = arith.mulf %12, %15 : vector<8x128x128xf32>
    %cst_5 = arith.constant 1.000000e+00 : f32
    %17 = vector.broadcast %cst_5 : f32 to vector<8x128x128xf32>
    %18 = arith.mulf %16, %17 : vector<8x128x128xf32>
    %c0_6 = arith.constant 0 : index
    %c0_7 = arith.constant 0 : index
    %19 = vector.load %arg6[%c0_6, %c0_7] : memref<8x128xf32, #tpu.memory_space<vmem>>, vector<8x128xf32>
    %cst_8 = arith.constant dense<0.000000e+00> : vector<8x128xf32>
    %20 = vector.multi_reduction <add>, %18, %cst_8 [2] : vector<8x128x128xf32> to vector<8x128xf32>
    %21 = arith.addf %19, %20 : vector<8x128xf32>
    %c0_9 = arith.constant 0 : index
    %c0_10 = arith.constant 0 : index
    %22 = vector.load %arg6[%c0_9, %c0_10] : memref<8x128xf32, #tpu.memory_space<vmem>>, vector<8x128xf32>
    tpu.vector_store %arg6[%c0_9, %c0_10], %21 {strides = array<i32>} : memref<8x128xf32, #tpu.memory_space<vmem>>, vector<8x128xf32>,
    %c0_i32_11 = arith.constant 0 : i32
    %23 = arith.cmpi eq, %arg2, %c0_i32_11 : i32
    %24 = arith.extui %23 : i1 to i32
    %c0_i32_12 = arith.constant 0 : i32
    %25 = arith.cmpi ne, %24, %c0_i32_12 : i32
    scf.if %25 {
      %c0_13 = arith.constant 0 : index
      %c0_14 = arith.constant 0 : index
      %26 = vector.load %arg6[%c0_13, %c0_14] : memref<8x128xf32, #tpu.memory_space<vmem>>, vector<8x128xf32>
      %cst_15 = arith.constant 6.250000e-02 : f32
      %27 = vector.broadcast %cst_15 : f32 to vector<8x128xf32>
      %28 = arith.mulf %26, %27 : vector<8x128xf32>
      %c0_16 = arith.constant 0 : index
      %c0_17 = arith.constant 0 : index
      %29 = vector.load %arg5[%c0_16, %c0_17] : memref<8x128xf32, #tpu.memory_space<vmem>>, vector<8x128xf32>
      tpu.vector_store %arg5[%c0_16, %c0_17], %28 {strides = array<i32>} : memref<8x128xf32, #tpu.memory_space<vmem>>, vector<8x128xf32>,
    } else {
    }
    return
  }
  func.func @transform_0(%arg0: i32, %arg1: i32, %arg2: i32) -> (i32, i32) {
    %c0_i32 = arith.constant 0 : i32
    return %arg0, %arg2 : i32, i32
  }
  func.func @transform_1(%arg0: i32, %arg1: i32, %arg2: i32) -> (i32, i32) {
    %c0_i32 = arith.constant 0 : i32
    return %arg1, %arg2 : i32, i32
  }
  func.func @transform_2(%arg0: i32, %arg1: i32, %arg2: i32) -> (i32, i32) {
    %c0_i32 = arith.constant 0 : i32
    return %arg0, %arg1 : i32, i32
  }
}

</mosaic_0001>

<bundles_post_ra>
// kernel: pairwise_smooth_l1_cost.1
= control target key start
LH: loop header
LB: loop body
LE: loop exit
PB: predicated region body
PF: predicated region fallthrough
CT: control target
= control target key end

     0   :  { %v38_v0 = vlaneseq  ;;  %v1985_v1 = vmov 1966171168   ;;  %vm1287_vm0 = vcmask 130112   ;;  %vm1294_vm1 = vcmask 195712   ;;  %s3241_s0 = inlined_call_operand.vmem [shape: f32[8,128], index: 0, kind: input, shape index: {}]   ;;  %s3242_s1 = inlined_call_operand.vmem [shape: f32[128,128], index: 1, kind: input, shape index: {}]   ;;  %s3243_s2 = inlined_call_operand.vmem [shape: f32[8,128], index: 2, kind: output, shape index: {}]  }
   0x1   :  { %v36_v2 = vunpack.c.l.s4 %v1985_v1  ;;  %v2007_v5 = vld [vmem:[%s3241_s0] sm:$0xff]  ;;  %v2022_v9 = vld [vmem:[%s3242_s1 + $0x10] sm:$0xff]  ;;  %v2036_v12 = vld [vmem:[%s3242_s1 + $0x18] sm:$0xff]  ;;  %vm1301_vm2 = vcmask 261312   ;;  %vm1308_vm3 = vcmask 326912   ;;  %vm1315_vm4 = vcmask 392512  }
   0x2   :  { %v2002_v3 = vshrl.u32 %v38_v0, 7  ;;  %v2031_v11 = vld [vmem:[%s3242_s1] sm:$0xff]  ;;  %v2041_v13 = vld [vmem:[%s3242_s1 + $0x8] sm:$0xff]  ;;  %v2060_v17 = vld [vmem:[%s3242_s1 + $0x38] sm:$0xff]  ;;  %vm1322_vm5 = vcmask 458112   ;;  %vm1329_vm6 = vcmask 523712  }
   0x3   :  { %v37_v4 = vunpack.c.0.s8 %v36_v2  ;;  %v2046_v14 = vld [vmem:[%s3242_s1 + $0x28] sm:$0xff]  ;;  %v2055_v16 = vld [vmem:[%s3242_s1 + $0x20] sm:$0xff]  ;;  %v2065_v18 = vld [vmem:[%s3242_s1 + $0x30] sm:$0xff]  ;;  %vm1336_vm7 = vcmask 589312   ;;  %vm1343_vm8 = vcmask 654912   ;;  %vm1350_vm9 = vcmask 720512  }
   0x4   :  { %v2017_v8 = vsub.s32 0, %v2002_v3  ;;  %v2070_v19 = vld [vmem:[%s3242_s1 + $0x48] sm:$0xff]  ;;  %v2083_v24 = vld [vmem:[%s3242_s1 + $0x40] sm:$0xff]  ;;  %v2106_v60 = vld [vmem:[%s3242_s1 + $0x58] sm:$0xff]  ;;  %vm1357_vm10 = vcmask 786112   ;;  %vm1364_vm11 = vcmask 851712  }
   0x5   :  { %v2010_v6 = vsub.s32 %v37_v4, %v2002_v3  ;;  %v2111_v63 = vld [vmem:[%s3242_s1 + $0x50] sm:$0xff]  ;;  %v2116_v1 = vld [vmem:[%s3242_s1 + $0x68] sm:$0xff]  ;;  %v2121_v2 = vld [vmem:[%s3242_s1 + $0x60] sm:$0xff]  ;;  %vm1371_vm12 = vcmask 917312   ;;  %vm1378_vm13 = vcmask 982912   ;;  %vm1385_vm14 = vcmask 1048512  }
   0x6   :  { %vm1940_vm15 = vcmask 1041409  }
   0x7   :  { %v2014_v7 = vrot.slane %v2007_v5, %v2010_v6 }
   0x9   :  { %v2026_v10 = vrot.slane %v2014_v7, %v2010_v6  ;;  %v49_v4 = vcombine.high %v2014_v7, %v2014_v7  ;;  %v2136_v7 = vld [vmem:[%s3242_s1 + $0x70] sm:$0xff] }
   0xb   :  { %v2050_v15 = vrot.slane %v2026_v10, %v2017_v8 }
   0xd   :  { %v125_v20 = vsub.f32 %v2050_v15, %v2022_v9  ;;  %v123_v21 = vsub.f32 %v2050_v15, %v2031_v11  ;;  %v126_v22 = vsub.f32 %v2050_v15, %v2036_v12  ;;  %v124_v23 = vsub.f32 %v2050_v15, %v2041_v13 }
   0xe   :  { %v128_v25 = vsub.f32 %v2050_v15, %v2046_v14  ;;  %v127_v26 = vsub.f32 %v2050_v15, %v2055_v16  ;;  %v130_v27 = vsub.f32 %v2050_v15, %v2060_v17  ;;  %v129_v28 = vsub.f32 %v2050_v15, %v2065_v18 }
   0xf   :  { %v253_v29 = vand.u32 2147483647, %v125_v20  ;;  %v251_v30 = vand.u32 2147483647, %v123_v21  ;;  %v254_v31 = vand.u32 2147483647, %v126_v22  ;;  %v132_v32 = vsub.f32 %v2050_v15, %v2070_v19 }
  0x10   :  { %v252_v33 = vand.u32 2147483647, %v124_v23  ;;  %v256_v34 = vand.u32 2147483647, %v128_v25  ;;  %v255_v35 = vand.u32 2147483647, %v127_v26  ;;  %v131_v36 = vsub.f32 %v2050_v15, %v2083_v24 }
  0x11   :  { %v381_v37 = vmin.f32 %v253_v29, 1.0  ;;  %v379_v38 = vmin.f32 %v251_v30, 1.0  ;;  %v382_v39 = vmin.f32 %v254_v31, 1.0  ;;  %v2097_v40 = vand.u32 2147483647, %v130_v27  ;;  %v2129_v25 = vld [vmem:[%s3242_s1 + $0x78] sm:$0xff] }
  0x12   :  { %v380_v41 = vmin.f32 %v252_v33, 1.0  ;;  %v384_v42 = vmin.f32 %v256_v34, 1.0  ;;  %v383_v43 = vmin.f32 %v255_v35, 1.0  ;;  %v2099_v44 = vand.u32 2147483647, %v129_v28 }
  0x13   :  { %v509_v45 = vmul.f32 0.5, %v381_v37  ;;  %v507_v46 = vmul.f32 0.5, %v379_v38  ;;  %v510_v47 = vmul.f32 0.5, %v382_v39  ;;  %v386_v48 = vmin.f32 %v2097_v40, 1.0 }
  0x14   :  { %v508_v49 = vmul.f32 0.5, %v380_v41  ;;  %v512_v50 = vmul.f32 0.5, %v384_v42  ;;  %v511_v51 = vmul.f32 0.5, %v383_v43  ;;  %v385_v52 = vmin.f32 %v2099_v44, 1.0 }
  0x15   :  { %v637_v53 = vsub.f32 %v253_v29, %v509_v45  ;;  %v635_v54 = vsub.f32 %v251_v30, %v507_v46  ;;  %v638_v55 = vsub.f32 %v254_v31, %v510_v47  ;;  %v514_v56 = vmul.f32 0.5, %v386_v48 }
  0x16   :  { %v636_v57 = vsub.f32 %v252_v33, %v508_v49  ;;  %v640_v58 = vsub.f32 %v256_v34, %v512_v50  ;;  %v639_v59 = vsub.f32 %v255_v35, %v511_v51  ;;  %v513_v23 = vmul.f32 0.5, %v385_v52 }
  0x17   :  { %v765_v61 = vmul.f32 %v637_v53, %v381_v37  ;;  %v763_v62 = vmul.f32 %v635_v54, %v379_v38  ;;  %v766_v20 = vmul.f32 %v638_v55, %v382_v39  ;;  %v642_v22 = vsub.f32 %v2097_v40, %v514_v56 }
  0x18   :  { %v764_v21 = vmul.f32 %v636_v57, %v380_v41  ;;  %v768_v26 = vmul.f32 %v640_v58, %v384_v42  ;;  %v260_v27 = vand.u32 2147483647, %v132_v32  ;;  %v259_v28 = vand.u32 2147483647, %v131_v36 }
  0x19   :  { %896 = vadd.xlane.f32.xlu1 %v765_v61  ;;  %892 = vadd.xlane.f32.xlu0 %v763_v62  ;;  %v134_v29 = vsub.f32 %v2050_v15, %v2106_v60  ;;  %v767_v30 = vmul.f32 %v639_v59, %v383_v43  ;;  %v133_v31 = vsub.f32 %v2050_v15, %v2111_v63 }
  0x1a   :  { %v136_v33 = vsub.f32 %v2050_v15, %v2116_v1  ;;  %v135_v34 = vsub.f32 %v2050_v15, %v2121_v2  ;;  %v388_v32 = vmin.f32 %v260_v27, 1.0  ;;  %v387_v35 = vmin.f32 %v259_v28, 1.0 }
  0x1b   :  { %v262_v36 = vand.u32 2147483647, %v134_v29  ;;  %v138_v37 = vsub.f32 %v2050_v15, %v2129_v25  ;;  %v261_v38 = vand.u32 2147483647, %v133_v31  ;;  %v137_v41 = vsub.f32 %v2050_v15, %v2136_v7 }
  0x1c   :  { %v2146_v39 = vand.u32 2147483647, %v136_v33  ;;  %v2148_v40 = vand.u32 2147483647, %v135_v34  ;;  %v641_v42 = vsub.f32 %v2099_v44, %v513_v23  ;;  %v516_v43 = vmul.f32 0.5, %v388_v32 }
  0x1d   :  { %898 = vadd.xlane.f32.xlu1 %v766_v20  ;;  %894 = vadd.xlane.f32.xlu0 %v764_v21  ;;  %v515_v45 = vmul.f32 0.5, %v387_v35  ;;  %v390_v46 = vmin.f32 %v262_v36, 1.0  ;;  %v389_v47 = vmin.f32 %v261_v38, 1.0  ;;  %v266_v50 = vand.u32 2147483647, %v138_v37 }
  0x1e   :  { %v392_v49 = vmin.f32 %v2146_v39, 1.0  ;;  %v391_v51 = vmin.f32 %v2148_v40, 1.0  ;;  %v2156_v53 = vrot.slane %v49_v4, %v2010_v6  ;;  %v644_v54 = vsub.f32 %v260_v27, %v516_v43 }
  0x1f   :  { %v643_v55 = vsub.f32 %v259_v28, %v515_v45  ;;  %v518_v56 = vmul.f32 0.5, %v390_v46  ;;  %v265_v15 = vand.u32 2147483647, %v137_v41  ;;  %v770_v57 = vmul.f32 %v642_v22, %v386_v48 }
  0x20   :  { %v769_v44 = vmul.f32 %v641_v42, %v385_v52  ;;  %v517_v58 = vmul.f32 0.5, %v389_v47  ;;  %v520_v59 = vmul.f32 0.5, %v392_v49  ;;  %v394_v61 = vmin.f32 %v266_v50, 1.0 }
  0x21   :  { %902 = vadd.xlane.f32.xlu1 %v768_v26  ;;  %900 = vadd.xlane.f32.xlu0 %v767_v30  ;;  %v519_v62 = vmul.f32 0.5, %v391_v51  ;;  %v2160_v20 = vrot.slane %v2156_v53, %v2017_v8  ;;  %v772_v21 = vmul.f32 %v644_v54, %v388_v32  ;;  %v771_v23 = vmul.f32 %v643_v55, %v387_v35 }
  0x22   :  { %v646_v4 = vsub.f32 %v262_v36, %v518_v56  ;;  %v393_v29 = vmin.f32 %v265_v15, 1.0  ;;  %v645_v27 = vsub.f32 %v261_v38, %v517_v58  ;;  %v648_v52 = vsub.f32 %v2146_v39, %v520_v59 }
  0x23   :  { %v140_v26 = vsub.f32 %v2160_v20, %v2041_v13  ;;  %v139_v48 = vsub.f32 %v2160_v20, %v2031_v11  ;;  %v522_v22 = vmul.f32 0.5, %v394_v61  ;;  %v142_v28 = vsub.f32 %v2160_v20, %v2036_v12 }
  0x24   :  { %v141_v30 = vsub.f32 %v2160_v20, %v2022_v9  ;;  %v144_v34 = vsub.f32 %v2160_v20, %v2046_v14  ;;  %v143_v32 = vsub.f32 %v2160_v20, %v2055_v16  ;;  %v647_v35 = vsub.f32 %v2148_v40, %v519_v62 }
  0x25   :  { %906 = vadd.xlane.f32.xlu1 %v770_v57  ;;  %904 = vadd.xlane.f32.xlu0 %v769_v44  ;;  %v268_v31 = vand.u32 2147483647, %v140_v26  ;;  %v267_v33 = vand.u32 2147483647, %v139_v48  ;;  %v521_v36 = vmul.f32 0.5, %v393_v29  ;;  %v774_v39 = vmul.f32 %v646_v4, %v390_v46 }
  0x26   :  { %v270_v37 = vand.u32 2147483647, %v142_v28  ;;  %v269_v38 = vand.u32 2147483647, %v141_v30  ;;  %v773_v41 = vmul.f32 %v645_v27, %v389_v47  ;;  %v146_v45 = vsub.f32 %v2160_v20, %v2060_v17 }
  0x27   :  { %v396_v42 = vmin.f32 %v268_v31, 1.0  ;;  %v395_v43 = vmin.f32 %v267_v33, 1.0  ;;  %v2178_v54 = vand.u32 2147483647, %v144_v34  ;;  %v2180_v55 = vand.u32 2147483647, %v143_v32 }
  0x28   :  { %v145_v56 = vsub.f32 %v2160_v20, %v2065_v18  ;;  %v650_v40 = vsub.f32 %v266_v50, %v522_v22  ;;  %v649_v57 = vsub.f32 %v265_v15, %v521_v36  ;;  %v398_v44 = vmin.f32 %v270_v37, 1.0 }
  0x29   :  { %910 = vadd.xlane.f32.xlu1 %v772_v21  ;;  %908 = vadd.xlane.f32.xlu0 %v771_v23  ;;  %v397_v58 = vmin.f32 %v269_v38, 1.0  ;;  %v776_v46 = vmul.f32 %v648_v52, %v392_v49  ;;  %v775_v47 = vmul.f32 %v647_v35, %v391_v51  ;;  %v524_v59 = vmul.f32 0.5, %v396_v42 }
  0x2a   :  { %v523_v62 = vmul.f32 0.5, %v395_v43  ;;  %v274_v21 = vand.u32 2147483647, %v146_v45  ;;  %v400_v23 = vmin.f32 %v2178_v54, 1.0  ;;  %v399_v4 = vmin.f32 %v2180_v55, 1.0 }
  0x2b   :  { %v273_v27 = vand.u32 2147483647, %v145_v56  ;;  %v778_v26 = vmul.f32 %v650_v40, %v394_v61  ;;  %v777_v48 = vmul.f32 %v649_v57, %v393_v29  ;;  %v526_v28 = vmul.f32 0.5, %v398_v44 }
  0x2c   :  { %v525_v30 = vmul.f32 0.5, %v397_v58  ;;  %v652_v50 = vsub.f32 %v268_v31, %v524_v59  ;;  %v651_v15 = vsub.f32 %v267_v33, %v523_v62  ;;  %v148_v49 = vsub.f32 %v2160_v20, %v2070_v19 }
  0x2d   :  { %914 = vadd.xlane.f32.xlu1 %v774_v39  ;;  %912 = vadd.xlane.f32.xlu0 %v773_v41  ;;  %v402_v51 = vmin.f32 %v274_v21, 1.0  ;;  %v147_v52 = vsub.f32 %v2160_v20, %v2083_v24  ;;  %v528_v22 = vmul.f32 0.5, %v400_v23  ;;  %v527_v34 = vmul.f32 0.5, %v399_v4 }
  0x2e   :  { %v401_v32 = vmin.f32 %v273_v27, 1.0  ;;  %v654_v35 = vsub.f32 %v270_v37, %v526_v28  ;;  %v653_v36 = vsub.f32 %v269_v38, %v525_v30  ;;  %v150_v61 = vsub.f32 %v2160_v20, %v2106_v60 }
  0x2f   :  { %v149_v29 = vsub.f32 %v2160_v20, %v2111_v63  ;;  %v780_v31 = vmul.f32 %v652_v50, %v396_v42  ;;  %v779_v33 = vmul.f32 %v651_v15, %v395_v43  ;;  %v276_v39 = vand.u32 2147483647, %v148_v49 }
  0x30   :  { %v275_v41 = vand.u32 2147483647, %v147_v52  ;;  %v530_v45 = vmul.f32 0.5, %v402_v51  ;;  %v656_v56 = vsub.f32 %v2178_v54, %v528_v22  ;;  %v152_v40 = vsub.f32 %v2160_v20, %v2116_v1 }
  0x31   :  { %918 = vadd.xlane.f32.xlu1 %v776_v46  ;;  %916 = vadd.xlane.f32.xlu0 %v775_v47  ;;  %v151_v37 = vsub.f32 %v2160_v20, %v2121_v2  ;;  %v79_v38 = vcombine.high %v2026_v10, %v2026_v10  ;;  %v655_v57 = vsub.f32 %v2180_v55, %v527_v34  ;;  %v529_v46 = vmul.f32 0.5, %v401_v32 }
  0x32   :  { %v278_v47 = vand.u32 2147483647, %v150_v61  ;;  %v277_v42 = vand.u32 2147483647, %v149_v29  ;;  %v782_v43 = vmul.f32 %v654_v35, %v398_v44  ;;  %v781_v59 = vmul.f32 %v653_v36, %v397_v58 }
  0x33   :  { %v404_v62 = vmin.f32 %v276_v39, 1.0  ;;  %v403_v54 = vmin.f32 %v275_v41, 1.0  ;;  %v2202_v28 = vand.u32 2147483647, %v151_v37  ;;  %v154_v30 = vsub.f32 %v2160_v20, %v2129_v25 }
  0x34   :  { %v153_v10 = vsub.f32 %v2160_v20, %v2136_v7  ;;  %v657_v55 = vsub.f32 %v273_v27, %v529_v46  ;;  %v406_v50 = vmin.f32 %v278_v47, 1.0  ;;  %v405_v15 = vmin.f32 %v277_v42, 1.0 }
  0x35   :  { %922 = vadd.xlane.f32.xlu1 %v778_v26  ;;  %920 = vadd.xlane.f32.xlu0 %v777_v48  ;;  %v658_v26 = vsub.f32 %v274_v21, %v530_v45  ;;  %v280_v48 = vand.u32 2147483647, %v152_v40  ;;  %v2209_v49 = vrot.slane %v79_v38, %v2017_v8  ;;  %v784_v44 = vmul.f32 %v656_v56, %v400_v23 }
  0x36   :  { %v783_v58 = vmul.f32 %v655_v57, %v399_v4  ;;  %v532_v21 = vmul.f32 0.5, %v404_v62  ;;  %v531_v52 = vmul.f32 0.5, %v403_v54  ;;  %v407_v35 = vmin.f32 %v2202_v28, 1.0 }
  0x37   :  { %v786_v22 = vmul.f32 %v658_v26, %v402_v51  ;;  %v408_v34 = vmin.f32 %v280_v48, 1.0  ;;  %v282_v36 = vand.u32 2147483647, %v154_v30  ;;  %v2212_v61 = vand.u32 2147483647, %v153_v10 }
  0x38   :  { %v785_v20 = vmul.f32 %v657_v55, %v401_v32  ;;  %v534_v27 = vmul.f32 0.5, %v406_v50  ;;  %v533_v29 = vmul.f32 0.5, %v405_v15  ;;  %v659_v23 = vsub.f32 %v275_v41, %v531_v52 }
  0x39   :  { %926 = vadd.xlane.f32.xlu1 %v780_v31  ;;  %924 = vadd.xlane.f32.xlu0 %v779_v33  ;;  %v156_v31 = vsub.f32 %v2209_v49, %v2041_v13  ;;  %v660_v33 = vsub.f32 %v276_v39, %v532_v21  ;;  %v155_v4 = vsub.f32 %v2209_v49, %v2031_v11  ;;  %v536_v51 = vmul.f32 0.5, %v408_v34 }
  0x3a   :  { %v535_v45 = vmul.f32 0.5, %v407_v35  ;;  %v410_v56 = vmin.f32 %v282_v36, 1.0  ;;  %v409_v40 = vmin.f32 %v2212_v61, 1.0  ;;  %v662_v37 = vsub.f32 %v278_v47, %v534_v27 }
  0x3b   :  { %v661_v38 = vsub.f32 %v277_v42, %v533_v29  ;;  %v284_v32 = vand.u32 2147483647, %v156_v31  ;;  %v158_v57 = vsub.f32 %v2209_v49, %v2036_v12  ;;  %v788_v46 = vmul.f32 %v660_v33, %v404_v62 }
  0x3c   :  { %v283_v39 = vand.u32 2147483647, %v155_v4  ;;  %v157_v41 = vsub.f32 %v2209_v49, %v2022_v9  ;;  %v538_v26 = vmul.f32 0.5, %v410_v56  ;;  %v160_v30 = vsub.f32 %v2209_v49, %v2046_v14 }
  0x3d   :  { %930 = vadd.xlane.f32.xlu1 %v782_v43  ;;  %928 = vadd.xlane.f32.xlu0 %v781_v59  ;;  %v787_v43 = vmul.f32 %v659_v23, %v403_v54  ;;  %v664_v59 = vsub.f32 %v280_v48, %v536_v51  ;;  %v159_v47 = vsub.f32 %v2209_v49, %v2055_v16  ;;  %v537_v10 = vmul.f32 0.5, %v409_v40 }
  0x3e   :  { %v663_v42 = vsub.f32 %v2202_v28, %v535_v45  ;;  %v412_v55 = vmin.f32 %v284_v32, 1.0  ;;  %v790_v62 = vmul.f32 %v662_v37, %v406_v50  ;;  %v789_v54 = vmul.f32 %v661_v38, %v405_v15 }
  0x3f   :  { %v285_v21 = vand.u32 2147483647, %v157_v41  ;;  %v162_v48 = vsub.f32 %v2209_v49, %v2060_v17  ;;  %v666_v52 = vsub.f32 %v282_v36, %v538_v26  ;;  %v792_v27 = vmul.f32 %v664_v59, %v408_v34 }
  0x40   :  { %v540_v29 = vmul.f32 0.5, %v412_v55  ;;  %v161_v28 = vsub.f32 %v2209_v49, %v2065_v18  ;;  %v791_v33 = vmul.f32 %v663_v42, %v407_v35  ;;  %v665_v50 = vsub.f32 %v2212_v61, %v537_v10 }
  0x41   :  { %934 = vadd.xlane.f32.xlu1 %v784_v44  ;;  %932 = vadd.xlane.f32.xlu0 %v783_v58  ;;  %v286_v44 = vand.u32 2147483647, %v158_v57  ;;  %v411_v58 = vmin.f32 %v283_v39, 1.0  ;;  %v413_v23 = vmin.f32 %v285_v21, 1.0  ;;  %v2235_v4 = vand.u32 2147483647, %v162_v48 }
  0x42   :  { %v164_v34 = vsub.f32 %v2209_v49, %v2070_v19  ;;  %v794_v45 = vmul.f32 %v666_v52, %v410_v56  ;;  %v668_v37 = vsub.f32 %v284_v32, %v540_v29  ;;  %v289_v57 = vand.u32 2147483647, %v161_v28 }
  0x43   :  { %v414_v31 = vmin.f32 %v286_v44, 1.0  ;;  %v539_v15 = vmul.f32 0.5, %v411_v58  ;;  %v163_v61 = vsub.f32 %v2209_v49, %v2083_v24  ;;  %v418_v41 = vmin.f32 %v2235_v4, 1.0 }
  0x44   :  { %v417_v10 = vmin.f32 %v289_v57, 1.0  ;;  %v166_v56 = vsub.f32 %v2209_v49, %v2106_v60 }
  0x45   :  { %938 = vadd.xlane.f32.xlu1 %v786_v22  ;;  %936 = vadd.xlane.f32.xlu0 %v785_v20  ;;  %v288_v22 = vand.u32 2147483647, %v160_v30  ;;  %v2230_v20 = vand.u32 2147483647, %v159_v47  ;;  %v542_v38 = vmul.f32 0.5, %v414_v31  ;;  %v667_v35 = vsub.f32 %v283_v39, %v539_v15 }
  0x46   :  { %v292_v30 = vand.u32 2147483647, %v164_v34  ;;  %v796_v47 = vmul.f32 %v668_v37, %v412_v55  ;;  %v291_v39 = vand.u32 2147483647, %v163_v61  ;;  %v168_v55 = vsub.f32 %v2209_v49, %v2116_v1 }
  0x47   :  { %v416_v51 = vmin.f32 %v288_v22, 1.0  ;;  %v415_v36 = vmin.f32 %v2230_v20, 1.0  ;;  %v670_v42 = vsub.f32 %v286_v44, %v542_v38  ;;  %v795_v32 = vmul.f32 %v667_v35, %v411_v58 }
  0x48   :  { %v545_v29 = vmul.f32 0.5, %v417_v10  ;;  %v294_v28 = vand.u32 2147483647, %v166_v56  ;;  %v2255_v34 = vand.u32 2147483647, %v168_v55 }
  0x49   :  { %942 = vadd.xlane.f32.xlu1 %v788_v46  ;;  %940 = vadd.xlane.f32.xlu0 %v787_v43  ;;  %v793_v46 = vmul.f32 %v665_v50, %v409_v40  ;;  %v541_v43 = vmul.f32 0.5, %v413_v23  ;;  %v544_v59 = vmul.f32 0.5, %v416_v51  ;;  %v543_v26 = vmul.f32 0.5, %v415_v36 }
  0x4a   :  { %v798_v44 = vmul.f32 %v670_v42, %v414_v31  ;;  %v170_v31 = vsub.f32 %v2209_v49, %v2129_v25  ;;  %v673_v38 = vsub.f32 %v289_v57, %v545_v29 }
  0x4b   :  { %v669_v40 = vsub.f32 %v285_v21, %v541_v43  ;;  %v672_v48 = vsub.f32 %v288_v22, %v544_v59  ;;  %v671_v52 = vsub.f32 %v2230_v20, %v543_v26  ;;  %v419_v21 = vmin.f32 %v291_v39, 1.0 }
  0x4c   :  { %v81_v22 = vcombine.high %v2156_v53, %v2156_v53  ;;  %v424_v59 = vmin.f32 %v2255_v34, 1.0  ;;  %v298_v26 = vand.u32 2147483647, %v170_v31  ;;  %v801_v56 = vmul.f32 %v673_v38, %v417_v10 }
  0x4d   :  { %946 = vadd.xlane.f32.xlu1 %v790_v62  ;;  %944 = vadd.xlane.f32.xlu0 %v789_v54  ;;  %v165_v62 = vsub.f32 %v2209_v49, %v2111_v63  ;;  %v546_v54 = vmul.f32 0.5, %v418_v41  ;;  %v797_v58 = vmul.f32 %v669_v40, %v413_v23  ;;  %v800_v37 = vmul.f32 %v672_v48, %v416_v51 }
  0x4e   :  { %v799_v35 = vmul.f32 %v671_v52, %v415_v36  ;;  %v547_v43 = vmul.f32 0.5, %v419_v21 }
  0x4f   :  { %v293_v50 = vand.u32 2147483647, %v165_v62  ;;  %v674_v20 = vsub.f32 %v2235_v4, %v546_v54  ;;  %v2262_v4 = vrot.slane %v81_v22, %v2017_v8  ;;  %v426_v54 = vmin.f32 %v298_v26, 1.0 }
  0x50   :  { %v675_v57 = vsub.f32 %v291_v39, %v547_v43 }
  0x51   :  { %950 = vadd.xlane.f32.xlu1 %v792_v27  ;;  %948 = vadd.xlane.f32.xlu0 %v791_v33  ;;  %v420_v27 = vmin.f32 %v292_v30, 1.0  ;;  %v167_v33 = vsub.f32 %v2209_v49, %v2121_v2  ;;  %v421_v53 = vmin.f32 %v293_v50, 1.0  ;;  %v802_v42 = vmul.f32 %v674_v20, %v418_v41 }
  0x52   :  { %v172_v36 = vsub.f32 %v2262_v4, %v2041_v13  ;;  %v171_v40 = vsub.f32 %v2262_v4, %v2031_v11  ;;  %v174_v41 = vsub.f32 %v2262_v4, %v2036_v12  ;;  %v173_v10 = vsub.f32 %v2262_v4, %v2022_v9 }
  0x53   :  { %v548_v15 = vmul.f32 0.5, %v420_v27  ;;  %v295_v23 = vand.u32 2147483647, %v167_v33  ;;  %v803_v39 = vmul.f32 %v675_v57, %v419_v21 }
  0x54   :  { %v300_v29 = vand.u32 2147483647, %v172_v36  ;;  %v299_v33 = vand.u32 2147483647, %v171_v40  ;;  %v2276_v31 = vand.u32 2147483647, %v173_v10 }
  0x55   :  { %954 = vadd.xlane.f32.xlu1 %v794_v45  ;;  %952 = vadd.xlane.f32.xlu0 %v793_v46  ;;  %v169_v45 = vsub.f32 %v2209_v49, %v2136_v7  ;;  %v422_v46 = vmin.f32 %v294_v28, 1.0  ;;  %v676_v61 = vsub.f32 %v292_v30, %v548_v15  ;;  %v423_v51 = vmin.f32 %v295_v23, 1.0 }
  0x56   :  { %v552_v30 = vmul.f32 0.5, %v424_v59  ;;  %v302_v15 = vand.u32 2147483647, %v174_v41  ;;  %v427_v38 = vmin.f32 %v299_v33, 1.0 }
  0x57   :  { %v550_v49 = vmul.f32 0.5, %v422_v46  ;;  %v804_v62 = vmul.f32 %v676_v61, %v420_v27  ;;  %v551_v55 = vmul.f32 0.5, %v423_v51  ;;  %v554_v27 = vmul.f32 0.5, %v426_v54 }
  0x59   :  { %958 = vadd.xlane.f32.xlu1 %v796_v47  ;;  %956 = vadd.xlane.f32.xlu0 %v795_v32  ;;  %v297_v47 = vand.u32 2147483647, %v169_v45  ;;  %v549_v32 = vmul.f32 0.5, %v421_v53  ;;  %v678_v52 = vsub.f32 %v294_v28, %v550_v49  ;;  %v176_v28 = vsub.f32 %v2262_v4, %v2046_v14 }
  0x5a   :  { %v679_v20 = vsub.f32 %v295_v23, %v551_v55  ;;  %v175_v45 = vsub.f32 %v2262_v4, %v2055_v16  ;;  %v178_v23 = vsub.f32 %v2262_v4, %v2060_v17 }
  0x5b   :  { %v425_v48 = vmin.f32 %v297_v47, 1.0  ;;  %v806_v21 = vmul.f32 %v678_v52, %v422_v46  ;;  %v2282_v61 = vand.u32 2147483647, %v176_v28  ;;  %v177_v46 = vsub.f32 %v2262_v4, %v2065_v18 }
  0x5c   :  { %v303_v49 = vand.u32 2147483647, %v175_v45  ;;  %v807_v57 = vmul.f32 %v679_v20, %v423_v51 }
  0x5d   :  { %962 = vadd.xlane.f32.xlu1 %v798_v44  ;;  %960 = vadd.xlane.f32.xlu0 %v797_v58  ;;  %v677_v44 = vsub.f32 %v293_v50, %v549_v32  ;;  %v680_v58 = vsub.f32 %v2255_v34, %v552_v30  ;;  %v553_v22 = vmul.f32 0.5, %v425_v48  ;;  %v34_v34 = vcombine.high %v2007_v5, %v2007_v5 }
  0x5e   :  { %v555_v5 = vmul.f32 0.5, %v427_v38  ;;  %v2295_v30 = vand.u32 2147483647, %v178_v23  ;;  %v431_v41 = vmin.f32 %v303_v49, 1.0  ;;  %v2297_v10 = vand.u32 2147483647, %v177_v46 }
  0x5f   :  { %v805_v50 = vmul.f32 %v677_v44, %v421_v53  ;;  %v681_v43 = vsub.f32 %v297_v47, %v553_v22  ;;  %v808_v53 = vmul.f32 %v680_v58, %v424_v59  ;;  %v2292_v47 = vrot.slane %v34_v34, %v2010_v6 }
  0x60   :  { %v683_v51 = vsub.f32 %v299_v33, %v555_v5  ;;  %v434_v58 = vmin.f32 %v2295_v30, 1.0  ;;  %v433_v33 = vmin.f32 %v2297_v10, 1.0 }
  0x61   :  { %966 = vadd.xlane.f32.xlu1 %v800_v37  ;;  %964 = vadd.xlane.f32.xlu0 %v799_v35  ;;  %v428_v37 = vmin.f32 %v300_v29, 1.0  ;;  %v682_v35 = vsub.f32 %v298_v26, %v554_v27  ;;  %v180_v26 = vsub.f32 %v2262_v4, %v2070_v19  ;;  %v809_v40 = vmul.f32 %v681_v43, %v425_v48 }
  0x62   :  { %v182_v27 = vsub.f32 %v2262_v4, %v2106_v60  ;;  %v811_v45 = vmul.f32 %v683_v51, %v427_v38  ;;  %v562_v43 = vmul.f32 0.5, %v434_v58 }
  0x63   :  { %v556_v32 = vmul.f32 0.5, %v428_v37  ;;  %v810_v36 = vmul.f32 %v682_v35, %v426_v54  ;;  %v2301_v44 = vand.u32 2147483647, %v180_v26  ;;  %v2305_v54 = vrot.slane %v2292_v47, %v2010_v6 }
  0x64   :  { %v184_v35 = vsub.f32 %v2262_v4, %v2116_v1  ;;  %v2324_v23 = vand.u32 2147483647, %v182_v27 }
  0x65   :  { %970 = vadd.xlane.f32.xlu1 %v802_v42  ;;  %968 = vadd.xlane.f32.xlu0 %v801_v56  ;;  %v430_v42 = vmin.f32 %v302_v15, 1.0  ;;  %v429_v56 = vmin.f32 %v2276_v31, 1.0  ;;  %v684_v59 = vsub.f32 %v300_v29, %v556_v32  ;;  %v559_v29 = vmul.f32 0.5, %v431_v41 }
  0x66   :  { %v436_v34 = vmin.f32 %v2301_v44, 1.0 }
  0x67   :  { %v558_v52 = vmul.f32 0.5, %v430_v42  ;;  %v557_v55 = vmul.f32 0.5, %v429_v56  ;;  %v812_v20 = vmul.f32 %v684_v59, %v428_v37  ;;  %v183_v37 = vsub.f32 %v2262_v4, %v2121_v2 }
  0x68   :  { %v687_v46 = vsub.f32 %v303_v49, %v559_v29  ;;  %v438_v49 = vmin.f32 %v2324_v23, 1.0 }
  0x69   :  { %974 = vadd.xlane.f32.xlu1 %v804_v62  ;;  %972 = vadd.xlane.f32.xlu0 %v803_v39  ;;  %v432_v62 = vmin.f32 %v2282_v61, 1.0  ;;  %v179_v39 = vsub.f32 %v2262_v4, %v2083_v24  ;;  %v686_v22 = vsub.f32 %v302_v15, %v558_v52  ;;  %v685_v28 = vsub.f32 %v2276_v31, %v557_v55 }
  0x6a   :  { %v2321_v15 = vrot.slane %v2305_v54, %v2017_v8  ;;  %v2340_v52 = vand.u32 2147483647, %v183_v37  ;;  %v815_v59 = vmul.f32 %v687_v46, %v431_v41 }
  0x6b   :  { %v560_v48 = vmul.f32 0.5, %v432_v62  ;;  %v814_v38 = vmul.f32 %v686_v22, %v430_v42  ;;  %v813_v32 = vmul.f32 %v685_v28, %v429_v56  ;;  %v690_v56 = vsub.f32 %v2295_v30, %v562_v43 }
  0x6c   :  { %v188_v42 = vsub.f32 %v2321_v15, %v2041_v13  ;;  %v439_v30 = vmin.f32 %v2340_v52, 1.0  ;;  %v187_v41 = vsub.f32 %v2321_v15, %v2031_v11 }
  0x6d   :  { %978 = vadd.xlane.f32.xlu1 %v806_v21  ;;  %976 = vadd.xlane.f32.xlu0 %v805_v50  ;;  %v2312_v21 = vand.u32 2147483647, %v179_v39  ;;  %v181_v50 = vsub.f32 %v2262_v4, %v2111_v63  ;;  %v688_v31 = vsub.f32 %v2282_v61, %v560_v48  ;;  %v185_v61 = vsub.f32 %v2262_v4, %v2136_v7 }
  0x6e   :  { %v2351_v28 = vand.u32 2147483647, %v188_v42  ;;  %v818_v29 = vmul.f32 %v690_v56, %v434_v58  ;;  %v2367_v58 = vand.u32 127, %v38_v0  ;;  %v2370_v46 = vand.u32 2147483647, %v187_v41 }
  0x6f   :  { %v435_v5 = vmin.f32 %v2312_v21, 1.0  ;;  %v2331_v26 = vand.u32 2147483647, %v181_v50  ;;  %v816_v55 = vmul.f32 %v688_v31, %v432_v62  ;;  %v2347_v27 = vand.u32 2147483647, %v185_v61 }
  0x70   :  { %v566_v62 = vmul.f32 0.5, %v438_v49  ;;  %v1289_v42 = vadd.s32 4294967280, %v2367_v58  ;;  %v1296_v41 = vadd.s32 4294967272, %v2367_v58 }
  0x71   :  { %982 = vadd.xlane.f32.xlu1 %v808_v53  ;;  %980 = vadd.xlane.f32.xlu0 %v807_v57  ;;  %v561_v53 = vmul.f32 0.5, %v433_v33  ;;  %v186_v57 = vsub.f32 %v2262_v4, %v2129_v25  ;;  %v563_v39 = vmul.f32 0.5, %v435_v5  ;;  %v437_v48 = vmin.f32 %v2331_v26, 1.0 }
  0x72   :  { %v441_v11 = vmin.f32 %v2347_v27, 1.0 }
  0x73   :  { %v2343_v51 = vand.u32 2147483647, %v186_v57  ;;  %v689_v4 = vsub.f32 %v2297_v10, %v561_v53  ;;  %v190_v10 = vsub.f32 %v2321_v15, %v2036_v12  ;;  %v565_v31 = vmul.f32 0.5, %v437_v48 }
  0x74   :  { %v444_v12 = vmin.f32 %v2351_v28, 1.0 }
  0x75   :  { %986 = vadd.xlane.f32.xlu1 %v810_v36  ;;  %984 = vadd.xlane.f32.xlu0 %v809_v40  ;;  %v564_v36 = vmul.f32 0.5, %v436_v34  ;;  %v2335_v40 = vand.u32 2147483647, %v184_v35  ;;  %v817_v50 = vmul.f32 %v689_v4, %v433_v33  ;;  %v691_v35 = vsub.f32 %v2312_v21, %v563_v39 }
  0x76   :  { %v693_v0 = vsub.f32 %v2331_v26, %v565_v31  ;;  %v572_v61 = vmul.f32 0.5, %v444_v12  ;;  %v195_v31 = vsub.f32 %v2321_v15, %v2083_v24  ;;  %v199_v24 = vsub.f32 %v2321_v15, %v2121_v2 }
  0x77   :  { %v692_v13 = vsub.f32 %v2301_v44, %v564_v36  ;;  %v440_v22 = vmin.f32 %v2335_v40, 1.0  ;;  %v192_v44 = vsub.f32 %v2321_v15, %v2046_v14  ;;  %v2372_v14 = vand.u32 2147483647, %v190_v10 }
  0x78   :  { %v819_v57 = vmul.f32 %v691_v35, %v435_v5  ;;  %v193_v36 = vsub.f32 %v2321_v15, %v2065_v18  ;;  %v821_v39 = vmul.f32 %v693_v0, %v437_v48  ;;  %v2434_v2 = vsub.s32 %v2367_v58, %v2002_v3 }
  0x79   :  { %990 = vadd.xlane.f32.xlu1 %v812_v20  ;;  %988 = vadd.xlane.f32.xlu0 %v811_v45  ;;  %v442_v20 = vmin.f32 %v2343_v51, 1.0  ;;  %v189_v45 = vsub.f32 %v2321_v15, %v2022_v9  ;;  %v820_v43 = vmul.f32 %v692_v13, %v436_v34  ;;  %v568_v37 = vmul.f32 0.5, %v440_v22 }
  0x7a   :  { %v694_v9 = vsub.f32 %v2324_v23, %v566_v62  ;;  %v2376_v21 = vand.u32 2147483647, %v192_v44  ;;  %v191_v34 = vsub.f32 %v2321_v15, %v2055_v16  ;;  %v194_v23 = vsub.f32 %v2321_v15, %v2060_v17 }
  0x7b   :  { %v570_v33 = vmul.f32 0.5, %v442_v20  ;;  %v2374_v53 = vand.u32 2147483647, %v189_v45  ;;  %v443_v16 = vmin.f32 %v2370_v46, 1.0  ;;  %v446_v5 = vmin.f32 %v2372_v14, 1.0 }
  0x7c   :  { %v448_v17 = vmin.f32 %v2376_v21, 1.0  ;;  %v2393_v4 = vand.u32 2147483647, %v191_v34  ;;  %v822_v18 = vmul.f32 %v694_v9, %v438_v49  ;;  %v2396_v13 = vand.u32 2147483647, %v194_v23 }
  0x7d   :  { %994 = vadd.xlane.f32.xlu1 %v814_v38  ;;  %992 = vadd.xlane.f32.xlu0 %v813_v32  ;;  %v567_v38 = vmul.f32 0.5, %v439_v30  ;;  %v569_v32 = vmul.f32 0.5, %v441_v11  ;;  %v698_v26 = vsub.f32 %v2343_v51, %v570_v33  ;;  %v445_v56 = vmin.f32 %v2374_v53, 1.0 }
  0x7e   :  { %v2399_v62 = vand.u32 2147483647, %v193_v36  ;;  %v196_v51 = vsub.f32 %v2321_v15, %v2070_v19  ;;  %v571_v45 = vmul.f32 0.5, %v443_v16  ;;  %v574_v44 = vmul.f32 0.5, %v446_v5 }
  0x7f   :  { %v573_v49 = vmul.f32 0.5, %v445_v56  ;;  %v576_v48 = vmul.f32 0.5, %v448_v17  ;;  %v198_v19 = vsub.f32 %v2321_v15, %v2106_v60  ;;  %v200_v9 = vsub.f32 %v2321_v15, %v2116_v1 }
  0x80   :  { %v2424_v33 = vsub.s32 %v1289_v42, %v2002_v3  ;;  %v50_v1 = vcombine.high %v2292_v47, %v2292_v47  ;;  %v2441_v23 = vand.u32 2147483647, %v199_v24  ;;  %v202_v47 = vsub.f32 %v2321_v15, %v2129_v25  ;;  %v2501_v24 = vld [vmem:[%s3242_s1] sm:$0xff] }
  0x81   :  { %998 = vadd.xlane.f32.xlu1 %v816_v55  ;;  %996 = vadd.xlane.f32.xlu0 %v815_v59  ;;  %v696_v55 = vsub.f32 %v2335_v40, %v568_v37  ;;  %v695_v59 = vsub.f32 %v2340_v52, %v567_v38  ;;  %v697_v40 = vsub.f32 %v2347_v27, %v569_v32  ;;  %v447_v27 = vmin.f32 %v2393_v4, 1.0 }
  0x82   :  { %v700_v52 = vsub.f32 %v2351_v28, %v572_v61  ;;  %v450_v28 = vmin.f32 %v2396_v13, 1.0  ;;  %v699_v37 = vsub.f32 %v2370_v46, %v571_v45  ;;  %v701_v60 = vsub.f32 %v2374_v53, %v573_v49 }
  0x83   :  { %v824_v10 = vmul.f32 %v696_v55, %v440_v22  ;;  %v825_v35 = vmul.f32 %v697_v40, %v441_v11  ;;  %v702_v11 = vsub.f32 %v2372_v14, %v574_v44  ;;  %v575_v38 = vmul.f32 0.5, %v447_v27 }
  0x84   :  { %v828_v22 = vmul.f32 %v700_v52, %v444_v12  ;;  %v704_v12 = vsub.f32 %v2376_v21, %v576_v48  ;;  %v2426_v46 = vand.u32 2147483647, %v195_v31  ;;  %v2428_v14 = vand.u32 2147483647, %v198_v19 }
  0x85   :  { %1002 = vadd.xlane.f32.xlu1 %v818_v29  ;;  %1000 = vadd.xlane.f32.xlu0 %v817_v50  ;;  %v823_v29 = vmul.f32 %v695_v59, %v439_v30  ;;  %v826_v50 = vmul.f32 %v698_v26, %v442_v20  ;;  %v449_v30 = vmin.f32 %v2399_v62, 1.0  ;;  %v197_v20 = vsub.f32 %v2321_v15, %v2111_v63 }
  0x86   :  { %v578_v63 = vmul.f32 0.5, %v450_v28  ;;  %v830_v0 = vmul.f32 %v702_v11, %v446_v5  ;;  %v2439_v32 = vand.u32 2147483647, %v200_v9  ;;  %v829_v61 = vmul.f32 %v701_v60, %v445_v56 }
  0x87   :  { %v577_v34 = vmul.f32 0.5, %v449_v30  ;;  %v2437_v21 = vand.u32 2147483647, %v197_v20  ;;  %v832_v36 = vmul.f32 %v704_v12, %v448_v17  ;;  %v703_v42 = vsub.f32 %v2393_v4, %v575_v38 }
  0x88   :  { %v706_v55 = vsub.f32 %v2396_v13, %v578_v63  ;;  %v451_v59 = vmin.f32 %v2426_v46, 1.0  ;;  %v2450_v5 = vrot.slane %v50_v1, %v2010_v6  ;;  %v201_v4 = vsub.f32 %v2321_v15, %v2136_v7 }
  0x89   :  { %1006 = vadd.xlane.f32.xlu1 %v820_v43  ;;  %1004 = vadd.xlane.f32.xlu0 %v819_v57  ;;  %v2411_v43 = vand.u32 2147483647, %v196_v51  ;;  %v827_v57 = vmul.f32 %v699_v37, %v443_v16  ;;  %v454_v16 = vmin.f32 %v2428_v14, 1.0  ;;  %v705_v26 = vsub.f32 %v2399_v62, %v577_v34 }
  0x8a   :  { %v453_v17 = vmin.f32 %v2437_v21, 1.0  ;;  %v2457_v25 = vsub.s32 %v1296_v41, %v2002_v3  ;;  %v455_v40 = vmin.f32 %v2441_v23, 1.0  ;;  %v831_v13 = vmul.f32 %v703_v42, %v447_v27 }
  0x8b   :  { %v452_v53 = vmin.f32 %v2411_v43, 1.0  ;;  %v1310_v6 = vadd.s32 4294967256, %v2367_v58  ;;  %v1303_v52 = vadd.s32 4294967264, %v2367_v58  ;;  %v2464_v62 = vand.u32 2147483647, %v202_v47 }
  0x8c   :  { %v834_v51 = vmul.f32 %v706_v55, %v450_v28  ;;  %v579_v7 = vmul.f32 0.5, %v451_v59  ;;  %v582_v15 = vmul.f32 0.5, %v454_v16  ;;  %v2468_v41 = vrot.slane %v2450_v5, %v2017_v8 }
  0x8d   :  { %1010 = vadd.xlane.f32.xlu1 %v822_v18  ;;  %1008 = vadd.xlane.f32.xlu0 %v821_v39  ;;  %v580_v56 = vmul.f32 0.5, %v452_v53  ;;  %v1282_v18 = vadd.s32 4294967288, %v2367_v58  ;;  %v456_v39 = vmin.f32 %v2439_v32, 1.0  ;;  %v581_v45 = vmul.f32 0.5, %v453_v17 }
  0x8e   :  { %v2471_v44 = vand.u32 2147483647, %v201_v4  ;;  %v583_v48 = vmul.f32 0.5, %v455_v40  ;;  %v80_v27 = vcombine.high %v2305_v54, %v2305_v54  ;;  %v2482_v28 = vsub.s32 %v1303_v52, %v2002_v3  ;;  %v2492_v54 = vld [vmem:[%s3242_s1 + $0x8] sm:$0xff] }
  0x8f   :  { %v584_v49 = vmul.f32 0.5, %v456_v39  ;;  %v1324_v31 = vadd.s32 4294967240, %v2367_v58  ;;  %v458_v19 = vmin.f32 %v2464_v62, 1.0  ;;  %v204_v20 = vsub.f32 %v2468_v41, %v2492_v54 }
  0x90   :  { %v709_v11 = vsub.f32 %v2437_v21, %v581_v45  ;;  %v457_v9 = vmin.f32 %v2471_v44, 1.0  ;;  %v203_v60 = vsub.f32 %v2468_v41, %v2501_v24  ;;  %v711_v38 = vsub.f32 %v2441_v23, %v583_v48 }
  0x91   :  { %1014 = vadd.xlane.f32.xlu1 %v824_v10  ;;  %1012 = vadd.xlane.f32.xlu0 %v823_v29  ;;  %v833_v10 = vmul.f32 %v705_v26, %v449_v30  ;;  %v708_v29 = vsub.f32 %v2411_v43, %v580_v56  ;;  %v710_v30 = vsub.f32 %v2428_v14, %v582_v15  ;;  %v1317_v43 = vadd.s32 4294967248, %v2367_v58 }
  0x92   :  { %v712_v12 = vsub.f32 %v2439_v32, %v584_v49  ;;  %v1338_v63 = vadd.s32 4294967224, %v2367_v58  ;;  %v2512_v14 = vsub.s32 %v1324_v31, %v2002_v3  ;;  %v586_v1 = vmul.f32 0.5, %v458_v19 }
  0x93   :  { %v836_v37 = vmul.f32 %v708_v29, %v452_v53  ;;  %v1331_v34 = vadd.s32 4294967232, %v2367_v58  ;;  %v2518_v53 = vld [vmem:[%s3242_s1 + $0x10] sm:$0xff]  ;;  %v2525_v32 = vsub.s32 %v1317_v43, %v2002_v3  ;;  %v2527_v23 = vand.u32 2147483647, %v204_v20 }
  0x94   :  { %v205_v21 = vsub.f32 %v2468_v41, %v2518_v53  ;;  %v585_v42 = vmul.f32 0.5, %v457_v9  ;;  %v2531_v47 = vand.u32 2147483647, %v203_v60  ;;  %v1352_v55 = vadd.s32 4294967208, %v2367_v58 }
  0x95   :  { %1018 = vadd.xlane.f32.xlu1 %v826_v50  ;;  %1016 = vadd.xlane.f32.xlu0 %v825_v35  ;;  %v2474_v50 = vsub.s32 %v1282_v18, %v2002_v3  ;;  %v2479_v35 = vsub.s32 %v1310_v6, %v2002_v3  ;;  %v714_v56 = vsub.f32 %v2464_v62, %v586_v1  ;;  %v2552_v18 = vld [vmem:[%s3242_s1 + $0x18] sm:$0xff] }
  0x96   :  { %v2547_v4 = vand.u32 2147483647, %v205_v21  ;;  %v82_v52 = vcombine.high %v2450_v5, %v2450_v5  ;;  %v713_v15 = vsub.f32 %v2471_v44, %v585_v42  ;;  %v459_v29 = vmin.f32 %v2531_v47, 1.0 }
  0x97   :  { %v1359_v5 = vadd.s32 4294967200, %v2367_v58 }
  0x98   :  { %v461_v31 = vmin.f32 %v2547_v4, 1.0  ;;  %v2587_v60 = vrot.slane %v82_v52, %v2017_v8 }
  0x99   :  { %1022 = vadd.xlane.f32.xlu1 %v828_v22  ;;  %1020 = vadd.xlane.f32.xlu0 %v827_v57  ;;  %v707_v22 = vsub.f32 %v2426_v46, %v579_v7  ;;  %v2509_v46 = vrot.slane %v80_v27, %v2017_v8  ;;  %v2573_v27 = vmul.f32 %v714_v56, %v458_v19 }
  0x9a   :  { %v589_v44 = vmul.f32 0.5, %v461_v31 }
  0x9b   :  { %v835_v57 = vmul.f32 %v707_v22, %v451_v59  ;;  %v2536_v59 = vmul.f32 %v711_v38, %v455_v40  ;;  %v219_v26 = vsub.f32 %v2509_v46, %v2501_v24  ;;  %v460_v40 = vmin.f32 %v2527_v23, 1.0 }
  0x9c   :  { %v220_v6 = vsub.f32 %v2509_v46, %v2492_v54  ;;  %v841_v38 = vmul.f32 %v713_v15, %v457_v9  ;;  %v221_v1 = vsub.f32 %v2509_v46, %v2518_v53 }
  0x9d   :  { %1026 = vadd.xlane.f32.xlu1 %v830_v0  ;;  %1024 = vadd.xlane.f32.xlu0 %v829_v61  ;;  %v2522_v0 = vmul.f32 %v710_v30, %v454_v16  ;;  %v837_v61 = vmul.f32 %v709_v11, %v453_v17  ;;  %v2539_v16 = vsub.s32 %v1338_v63, %v2002_v3  ;;  %v2570_v48 = vand.u32 2147483647, %v219_v26 }
  0x9e   :  { %v2545_v17 = vsub.s32 %v1331_v34, %v2002_v3  ;;  %v1380_v30 = vadd.s32 4294967176, %v2367_v58  ;;  %v588_v43 = vmul.f32 0.5, %v460_v40  ;;  %v2584_v11 = vand.u32 2147483647, %v220_v6 }
  0x9f   :  { %v475_v21 = vmin.f32 %v2570_v48, 1.0 }
  0xa0   :  { %v2608_v42 = vsub.s32 %v1380_v30, %v2002_v3  ;;  %v716_v56 = vsub.f32 %v2527_v23, %v588_v43  ;;  %v236_v30 = vsub.f32 %v2587_v60, %v2492_v54  ;;  %v222_v43 = vsub.f32 %v2509_v46, %v2552_v18 }
  0xa1   :  { %1030 = vadd.xlane.f32.xlu1 %v832_v36  ;;  %1028 = vadd.xlane.f32.xlu0 %v831_v13  ;;  %v2534_v36 = vmul.f32 %v712_v12, %v456_v39  ;;  %v206_v39 = vsub.f32 %v2468_v41, %v2552_v18  ;;  %v1345_v13 = vadd.s32 4294967216, %v2367_v58 }
  0xa2   :  { %v2665_v23 = vand.u32 2147483647, %v236_v30  ;;  %v238_v30 = vsub.f32 %v2587_v60, %v2552_v18 }
  0xa3   :  { %v2576_v22 = vand.u32 2147483647, %v206_v39  ;;  %v2582_v20 = vsub.s32 %v1345_v13, %v2002_v3  ;;  %v476_v39 = vmin.f32 %v2584_v11, 1.0  ;;  %v235_v13 = vsub.f32 %v2587_v60, %v2501_v24 }
  0xa5   :  { %1034 = vadd.xlane.f32.xlu1 %v834_v51  ;;  %1032 = vadd.xlane.f32.xlu0 %v833_v10  ;;  %v2565_v51 = vsub.s32 %v1352_v55, %v2002_v3  ;;  %v1366_v10 = vadd.s32 4294967192, %v2367_v58  ;;  %v462_v9 = vmin.f32 %v2576_v22, 1.0  ;;  %v1373_v55 = vadd.s32 4294967184, %v2367_v58 }
  0xa6   :  { %v897_v62 = vpop.xlane.xlu1 %896  ;;  %v893_v7 = vpop.xlane.xlu0 %892  ;;  %v2619_v58 = vand.u32 2147483647, %v221_v1  ;;  %v2650_v1 = vand.u32 2147483647, %v235_v13 }
  0xa7   :  { %v1293_v45 = vrot.slane %v897_v62, %v2424_v33  ;;  %v1281_v49 = vrot.slane %v893_v7, %v2434_v2  ;;  %v2594_v63 = vsub.s32 %v1366_v10, %v2002_v3 }
  0xa9   :  { %1038 = vadd.xlane.f32.xlu1 %v836_v37  ;;  %1036 = vadd.xlane.f32.xlu0 %v835_v57  ;;  %v587_v37 = vmul.f32 0.5, %v459_v29  ;;  %v2602_v57 = vsub.s32 %v1359_v5, %v2002_v3  ;;  %v2638_v5 = vsub.s32 %v1373_v55, %v2002_v3  ;;  %v477_v55 = vmin.f32 %v2619_v58, 1.0 }
  0xaa   :  { %v899_v19 = vpop.xlane.xlu1 %898  ;;  %v895_v12 = vpop.xlane.xlu0 %894 }
  0xab   :  { %v1300_v34 = vrot.slane %v899_v19, %v2457_v25  ;;  %v1286_v8 = vrot.slane %v895_v12, %v2474_v50  ;;  %v715_v7 = vsub.f32 %v2531_v47, %v587_v37  ;;  %v717_v12 = vsub.f32 %v2547_v4, %v589_v44 }
  0xac   :  { %v604_v37 = vmul.f32 0.5, %v476_v39  ;;  %v491_v47 = vmin.f32 %v2650_v1, 1.0 }
  0xad   :  { %v1288_v26 = vsel %vm1287_vm0, %v1286_v8, %v1281_v49  ;;  %1042 = vadd.xlane.f32.xlu1 %v2522_v0  ;;  %1040 = vadd.xlane.f32.xlu0 %v837_v61  ;;  %v2624_v0 = vld [vmem:[%s3242_s1 + $0x20] sm:$0xff]  ;;  %v2635_v49 = vmul.f32 0.5, %v462_v9  ;;  %v844_v8 = vmul.f32 %v716_v56, %v460_v40  ;;  %v2667_v40 = vand.u32 2147483647, %v222_v43 }
  0xae   :  { %v1295_v6 = vsel %vm1294_vm1, %v1293_v45, %v1288_v26  ;;  %v903_v52 = vpop.xlane.xlu1 %902  ;;  %v901_v62 = vpop.xlane.xlu0 %900  ;;  %v207_v61 = vsub.f32 %v2468_v41, %v2624_v0  ;;  %v603_v45 = vmul.f32 0.5, %v475_v21  ;;  %v843_v26 = vmul.f32 %v715_v7, %v459_v29  ;;  %v2677_v29 = vld [vmem:[%s3242_s1 + $0x28] sm:$0xff] }
  0xaf   :  { %v1314_v15 = vrot.slane %v903_v52, %v2479_v35  ;;  %v1302_v24 = vsel %vm1301_vm2, %v1300_v34, %v1295_v6  ;;  %v1307_v10 = vrot.slane %v901_v62, %v2482_v28  ;;  %v718_v6 = vsub.f32 %v2576_v22, %v2635_v49 }
  0xb0   :  { %v731_v13 = vsub.f32 %v2570_v48, %v603_v45  ;;  %v237_v56 = vsub.f32 %v2587_v60, %v2518_v53  ;;  %v208_v62 = vsub.f32 %v2468_v41, %v2677_v29  ;;  %v223_v7 = vsub.f32 %v2509_v46, %v2624_v0 }
  0xb1   :  { %v1309_v19 = vsel %vm1308_vm3, %v1307_v10, %v1302_v24  ;;  %1046 = vadd.xlane.f32.xlu1 %v2534_v36  ;;  %1044 = vadd.xlane.f32.xlu0 %v2536_v59  ;;  %v2656_v36 = vand.u32 2147483647, %v207_v61  ;;  %v732_v49 = vsub.f32 %v2584_v11, %v604_v37  ;;  %v478_v43 = vmin.f32 %v2667_v40, 1.0 }
  0xb2   :  { %v907_v3 = vpop.xlane.xlu1 %906  ;;  %v1316_v34 = vsel %vm1315_vm4, %v1314_v15, %v1309_v19  ;;  %v905_v54 = vpop.xlane.xlu0 %904  ;;  %v859_v4 = vmul.f32 %v731_v13, %v475_v21  ;;  %v2698_v19 = vand.u32 2147483647, %v237_v56  ;;  %v619_v37 = vmul.f32 0.5, %v491_v47 }
  0xb3   :  { %v1328_v59 = vrot.slane %v907_v3, %v2512_v14  ;;  %v1321_v44 = vrot.slane %v905_v54, %v2525_v32  ;;  %v463_v24 = vmin.f32 %v2656_v36, 1.0  ;;  %v2703_v3 = vand.u32 2147483647, %v208_v62 }
  0xb4   :  { %v846_v56 = vmul.f32 %v718_v6, %v462_v9  ;;  %v860_v62 = vmul.f32 %v732_v49, %v476_v39 }
  0xb5   :  { %v1323_v52 = vsel %vm1322_vm5, %v1321_v44, %v1316_v34  ;;  %1050 = vadd.xlane.f32.xlu1 %v2573_v27  ;;  %1048 = vadd.xlane.f32.xlu0 %v841_v38  ;;  %v845_v27 = vmul.f32 %v717_v12, %v461_v31  ;;  %v605_v38 = vmul.f32 0.5, %v477_v55  ;;  %v492_v31 = vmin.f32 %v2665_v23, 1.0 }
  0xb6   :  { %v911_v61 = vpop.xlane.xlu1 %910  ;;  %v1330_v53 = vsel %vm1329_vm6, %v1328_v59, %v1323_v52  ;;  %v909_v15 = vpop.xlane.xlu0 %908  ;;  %v2705_v34 = vand.u32 2147483647, %v223_v7  ;;  %v591_v59 = vmul.f32 0.5, %v463_v24  ;;  %v2722_v52 = vand.u32 2147483647, %v238_v30 }
  0xb7   :  { %v1342_v10 = vrot.slane %v911_v61, %v2539_v16  ;;  %v1335_v45 = vrot.slane %v909_v15, %v2545_v17  ;;  %v733_v54 = vsub.f32 %v2619_v58, %v605_v38  ;;  %v620_v7 = vmul.f32 0.5, %v492_v31 }
  0xb8   :  { %v606_v61 = vmul.f32 0.5, %v478_v43  ;;  %v747_v38 = vsub.f32 %v2650_v1, %v619_v37  ;;  %v464_v22 = vmin.f32 %v2703_v3, 1.0  ;;  %v479_v9 = vmin.f32 %v2705_v34, 1.0 }
  0xb9   :  { %v1337_v12 = vsel %vm1336_vm7, %v1335_v45, %v1330_v53  ;;  %1054 = vadd.xlane.f32.xlu1 %v844_v8  ;;  %1052 = vadd.xlane.f32.xlu0 %v843_v26  ;;  %v2714_v8 = vld [vmem:[%s3242_s1 + $0x30] sm:$0xff]  ;;  %v493_v53 = vmin.f32 %v2698_v19, 1.0  ;;  %v719_v45 = vsub.f32 %v2656_v36, %v591_v59  ;;  %v748_v37 = vsub.f32 %v2665_v23, %v620_v7  ;;  %v2756_v59 = vld [vmem:[%s3242_s1 + $0x38] sm:$0xff] }
  0xba   :  { %v915_v18 = vpop.xlane.xlu1 %914  ;;  %v1344_v48 = vsel %vm1343_vm8, %v1342_v10, %v1337_v12  ;;  %v913_v21 = vpop.xlane.xlu0 %912  ;;  %v209_v44 = vsub.f32 %v2468_v41, %v2714_v8  ;;  %v861_v10 = vmul.f32 %v733_v54, %v477_v55  ;;  %v224_v12 = vsub.f32 %v2509_v46, %v2677_v29 }
  0xbb   :  { %v1356_v26 = vrot.slane %v915_v18, %v2565_v51  ;;  %v1349_v13 = vrot.slane %v913_v21, %v2582_v20  ;;  %v734_v18 = vsub.f32 %v2667_v40, %v606_v61  ;;  %v239_v58 = vsub.f32 %v2587_v60, %v2624_v0 }
  0xbc   :  { %v2737_v49 = vand.u32 2147483647, %v209_v44  ;;  %v875_v21 = vmul.f32 %v747_v38, %v491_v47  ;;  %v592_v54 = vmul.f32 0.5, %v464_v22  ;;  %v210_v40 = vsub.f32 %v2468_v41, %v2756_v59 }
  0xbd   :  { %v1351_v15 = vsel %vm1350_vm9, %v1349_v13, %v1344_v48  ;;  %1084 = vadd.xlane.f32.xlu1 %v859_v4  ;;  %1056 = vadd.xlane.f32.xlu0 %v845_v27  ;;  %v494_v4 = vmin.f32 %v2722_v52, 1.0  ;;  %v621_v48 = vmul.f32 0.5, %v493_v53  ;;  %v847_v13 = vmul.f32 %v719_v45, %v463_v24 }
  0xbe   :  { %v919_v6 = vpop.xlane.xlu1 %918  ;;  %v1358_v11 = vsel %vm1357_vm10, %v1356_v26, %v1351_v15  ;;  %v917_v39 = vpop.xlane.xlu0 %916  ;;  %v607_v1 = vmul.f32 0.5, %v479_v9  ;;  %v465_v47 = vmin.f32 %v2737_v49, 1.0  ;;  %v2768_v61 = vand.u32 2147483647, %v224_v12 }
  0xbf   :  { %v1370_v30 = vrot.slane %v919_v6, %v2594_v63  ;;  %v1363_v27 = vrot.slane %v917_v39, %v2602_v57  ;;  %v622_v7 = vmul.f32 0.5, %v494_v4  ;;  %v862_v15 = vmul.f32 %v734_v18, %v478_v43 }
  0xc0   :  { %v749_v38 = vsub.f32 %v2698_v19, %v621_v48  ;;  %v2771_v6 = vand.u32 2147483647, %v239_v58  ;;  %v225_v36 = vsub.f32 %v2509_v46, %v2714_v8  ;;  %v2778_v39 = vand.u32 2147483647, %v210_v40 }
  0xc1   :  { %v1365_v55 = vsel %vm1364_vm11, %v1363_v27, %v1358_v11  ;;  %1058 = vadd.xlane.f32.xlu1 %v846_v56  ;;  %1086 = vadd.xlane.f32.xlu0 %v860_v62  ;;  %v876_v11 = vmul.f32 %v748_v37, %v492_v31  ;;  %v240_v45 = vsub.f32 %v2587_v60, %v2677_v29  ;;  %v593_v18 = vmul.f32 0.5, %v465_v47 }
  0xc2   :  { %v923_v44 = vpop.xlane.xlu1 %922  ;;  %v1372_v0 = vsel %vm1371_vm12, %v1370_v30, %v1365_v55  ;;  %v921_v26 = vpop.xlane.xlu0 %920  ;;  %v720_v27 = vsub.f32 %v2703_v3, %v592_v54  ;;  %v735_v12 = vsub.f32 %v2705_v34, %v607_v1  ;;  %v750_v31 = vsub.f32 %v2722_v52, %v622_v7  ;;  %v2797_v55 = vld [vmem:[%s3242_s1 + $0x40] sm:$0xff] }
  0xc3   :  { %v1384_v56 = vrot.slane %v923_v44, %v2608_v42  ;;  %v1377_v62 = vrot.slane %v921_v26, %v2638_v5  ;;  %v480_v37 = vmin.f32 %v2768_v61, 1.0  ;;  %v877_v48 = vmul.f32 %v749_v38, %v493_v53 }
  0xc4   :  { %v495_v29 = vmin.f32 %v2771_v6, 1.0  ;;  %v2792_v58 = vand.u32 2147483647, %v225_v36  ;;  %v466_v52 = vmin.f32 %v2778_v39, 1.0  ;;  %v2803_v40 = vand.u32 2147483647, %v240_v45 }
  0xc5   :  { %v1379_v24 = vsel %vm1378_vm13, %v1377_v62, %v1372_v0  ;;  %1088 = vadd.xlane.f32.xlu0 %v861_v10  ;;  %1116 = vadd.xlane.f32.xlu1 %v875_v21  ;;  %v211_v21 = vsub.f32 %v2468_v41, %v2797_v55  ;;  %v226_v53 = vsub.f32 %v2509_v46, %v2756_v59  ;;  %v608_v38 = vmul.f32 0.5, %v480_v37 }
  0xc6   :  { %v2783_v43 = vsel %vm1385_vm14, %v1384_v56, %v1379_v24  ;;  %v927_v19 = vpop.xlane.xlu1 %926  ;;  %v925_v30 = vpop.xlane.xlu0 %924  ;;  %v848_v26 = vmul.f32 %v720_v27, %v464_v22  ;;  %v863_v1 = vmul.f32 %v735_v12, %v479_v9  ;;  %v721_v56 = vsub.f32 %v2737_v49, %v593_v18  ;;  %v2827_v27 = vld [vmem:[%s3242_s1 + $0x48] sm:$0xff] }
  0xc7   :  { %v1394_v10 = vrot.slane %v927_v19, %v2474_v50  ;;  %v1390_v23 = vrot.slane %v925_v30, %v2434_v2  ;;  %v878_v7 = vmul.f32 %v750_v31, %v494_v4  ;;  %v623_v36 = vmul.f32 0.5, %v495_v29 }
  0xc8   :  { %v481_v24 = vmin.f32 %v2792_v58, 1.0  ;;  %v241_v3 = vsub.f32 %v2587_v60, %v2714_v8  ;;  %v594_v34 = vmul.f32 0.5, %v466_v52  ;;  %v496_v9 = vmin.f32 %v2803_v40, 1.0 }
  0xc9   :  { %v1395_v54 = vsel %vm1287_vm0, %v1394_v10, %v1390_v23  ;;  %1118 = vadd.xlane.f32.xlu0 %v876_v11  ;;  %1060 = vadd.xlane.f32.xlu1 %v847_v13  ;;  %v2815_v11 = vand.u32 2147483647, %v211_v21  ;;  %v2821_v49 = vand.u32 2147483647, %v226_v53  ;;  %v849_v30 = vmul.f32 %v721_v56, %v465_v47 }
  0xca   :  { %v931_v44 = vpop.xlane.xlu1 %930  ;;  %v929_v0 = vpop.xlane.xlu0 %928  ;;  %v212_v8 = vsub.f32 %v2468_v41, %v2827_v27  ;;  %v736_v10 = vsub.f32 %v2768_v61, %v608_v38  ;;  %v242_v47 = vsub.f32 %v2587_v60, %v2756_v59  ;;  %v751_v23 = vsub.f32 %v2771_v6, %v623_v36 }
  0xcb   :  { %v1404_v62 = vrot.slane %v931_v44, %v2457_v25  ;;  %v1399_v13 = vrot.slane %v929_v0, %v2424_v33  ;;  %v609_v31 = vmul.f32 0.5, %v481_v24  ;;  %v2840_v21 = vand.u32 2147483647, %v241_v3 }
  0xcc   :  { %v722_v53 = vsub.f32 %v2778_v39, %v594_v34  ;;  %v624_v44 = vmul.f32 0.5, %v496_v9  ;;  %v482_v0 = vmin.f32 %v2821_v49, 1.0  ;;  %v864_v38 = vmul.f32 %v736_v10, %v480_v37 }
  0xcd   :  { %v1400_v22 = vsel %vm1294_vm1, %v1399_v13, %v1395_v54  ;;  %1090 = vadd.xlane.f32.xlu0 %v862_v15  ;;  %1120 = vadd.xlane.f32.xlu1 %v877_v48  ;;  %v227_v15 = vsub.f32 %v2509_v46, %v2797_v55  ;;  %v467_v48 = vmin.f32 %v2815_v11, 1.0  ;;  %v2853_v13 = vld [vmem:[%s3242_s1 + $0x50] sm:$0xff]  ;;  %v2859_v36 = vand.u32 2147483647, %v242_v47 }
  0xce   :  { %v935_v45 = vpop.xlane.xlu1 %934  ;;  %v1405_v4 = vsel %vm1301_vm2, %v1404_v62, %v1400_v22  ;;  %v933_v19 = vpop.xlane.xlu0 %932  ;;  %v2846_v62 = vand.u32 2147483647, %v212_v8  ;;  %v879_v3 = vmul.f32 %v751_v23, %v495_v29  ;;  %v737_v22 = vsub.f32 %v2792_v58, %v609_v31 }
  0xcf   :  { %v1414_v12 = vrot.slane %v935_v45, %v2479_v35  ;;  %v1409_v18 = vrot.slane %v933_v19, %v2482_v28  ;;  %v2848_v6 = vand.u32 2147483647, %v227_v15  ;;  %v595_v34 = vmul.f32 0.5, %v467_v48 }
  0xd0   :  { %v497_v45 = vmin.f32 %v2840_v21, 1.0  ;;  %v850_v19 = vmul.f32 %v722_v53, %v466_v52  ;;  %v752_v8 = vsub.f32 %v2803_v40, %v624_v44  ;;  %v610_v15 = vmul.f32 0.5, %v482_v0 }
  0xd1   :  { %v1410_v54 = vsel %vm1308_vm3, %v1409_v18, %v1405_v4  ;;  %1062 = vadd.xlane.f32.xlu0 %v848_v26  ;;  %1092 = vadd.xlane.f32.xlu1 %v863_v1  ;;  %v213_v26 = vsub.f32 %v2468_v41, %v2853_v13  ;;  %v468_v10 = vmin.f32 %v2846_v62, 1.0  ;;  %v483_v29 = vmin.f32 %v2848_v6, 1.0 }
  0xd2   :  { %v939_v61 = vpop.xlane.xlu1 %938  ;;  %v1415_v56 = vsel %vm1315_vm4, %v1414_v12, %v1410_v54  ;;  %v937_v59 = vpop.xlane.xlu0 %936  ;;  %v228_v52 = vsub.f32 %v2509_v46, %v2827_v27  ;;  %v865_v40 = vmul.f32 %v737_v22, %v481_v24  ;;  %v625_v31 = vmul.f32 0.5, %v497_v45 }
  0xd3   :  { %v1424_v39 = vrot.slane %v939_v61, %v2512_v14  ;;  %v1419_v1 = vrot.slane %v937_v59, %v2525_v32  ;;  %v2868_v58 = vand.u32 2147483647, %v213_v26  ;;  %v243_v54 = vsub.f32 %v2587_v60, %v2797_v55 }
  0xd4   :  { %v880_v44 = vmul.f32 %v752_v8, %v496_v9  ;;  %v738_v61 = vsub.f32 %v2821_v49, %v610_v15  ;;  %v596_v24 = vmul.f32 0.5, %v468_v10  ;;  %v753_v9 = vsub.f32 %v2840_v21, %v625_v31  ;;  %v2894_v49 = vld [vmem:[%s3242_s1 + $0x58] sm:$0xff] }
  0xd5   :  { %v1420_v4 = vsel %vm1322_vm5, %v1419_v1, %v1415_v56  ;;  %1122 = vadd.xlane.f32.xlu0 %v878_v7  ;;  %1064 = vadd.xlane.f32.xlu1 %v849_v30  ;;  %v498_v7 = vmin.f32 %v2859_v36, 1.0  ;;  %v723_v30 = vsub.f32 %v2815_v11, %v595_v34  ;;  %v469_v11 = vmin.f32 %v2868_v58, 1.0 }
  0xd6   :  { %v943_v12 = vpop.xlane.xlu1 %942  ;;  %v1425_v18 = vsel %vm1329_vm6, %v1424_v39, %v1420_v4  ;;  %v941_v37 = vpop.xlane.xlu0 %940  ;;  %v611_v39 = vmul.f32 0.5, %v483_v29  ;;  %v2886_v34 = vand.u32 2147483647, %v228_v52  ;;  %v214_v4 = vsub.f32 %v2468_v41, %v2894_v49 }
  0xd7   :  { %v1434_v47 = vrot.slane %v943_v12, %v2539_v16  ;;  %v1429_v23 = vrot.slane %v941_v37, %v2545_v17  ;;  %v626_v55 = vmul.f32 0.5, %v498_v7  ;;  %v866_v15 = vmul.f32 %v738_v61, %v482_v0 }
  0xd8   :  { %v597_v52 = vmul.f32 0.5, %v469_v11  ;;  %v484_v0 = vmin.f32 %v2886_v34, 1.0 }
  0xd9   :  { %v1430_v53 = vsel %vm1336_vm7, %v1429_v23, %v1425_v18  ;;  %1094 = vadd.xlane.f32.xlu0 %v864_v38  ;;  %1124 = vadd.xlane.f32.xlu1 %v879_v3  ;;  %v851_v38 = vmul.f32 %v723_v30, %v467_v48  ;;  %v2889_v3 = vand.u32 2147483647, %v243_v54  ;;  %v229_v48 = vsub.f32 %v2509_v46, %v2853_v13 }
  0xda   :  { %v947_v56 = vpop.xlane.xlu1 %946  ;;  %v1435_v59 = vsel %vm1343_vm8, %v1434_v47, %v1430_v53  ;;  %v945_v26 = vpop.xlane.xlu0 %944  ;;  %v724_v47 = vsub.f32 %v2846_v62, %v596_v24  ;;  %v739_v23 = vsub.f32 %v2848_v6, %v611_v39  ;;  %v2909_v54 = vand.u32 2147483647, %v214_v4  ;;  %v2916_v62 = vld [vmem:[%s3242_s1 + $0x60] sm:$0xff] }
  0xdb   :  { %v1444_v1 = vrot.slane %v947_v56, %v2565_v51  ;;  %v1439_v22 = vrot.slane %v945_v26, %v2582_v20  ;;  %v244_v53 = vsub.f32 %v2587_v60, %v2827_v27  ;;  %v215_v6 = vsub.f32 %v2468_v41, %v2916_v62 }
  0xdc   :  { %v2923_v56 = vand.u32 2147483647, %v229_v48  ;;  %v230_v27 = vsub.f32 %v2509_v46, %v2894_v49  ;;  %v852_v39 = vmul.f32 %v724_v47, %v468_v10  ;;  %v612_v21 = vmul.f32 0.5, %v484_v0  ;;  %v2946_v47 = vld [vmem:[%s3242_s1 + $0x68] sm:$0xff] }
  0xdd   :  { %v1440_v8 = vsel %vm1350_vm9, %v1439_v22, %v1435_v59  ;;  %1066 = vadd.xlane.f32.xlu0 %v850_v19  ;;  %1096 = vadd.xlane.f32.xlu1 %v865_v40  ;;  %v754_v19 = vsub.f32 %v2859_v36, %v626_v55  ;;  %v499_v40 = vmin.f32 %v2889_v3, 1.0  ;;  %v881_v36 = vmul.f32 %v753_v9, %v497_v45 }
  0xde   :  { %v951_v12 = vpop.xlane.xlu1 %950  ;;  %v1445_v18 = vsel %vm1357_vm10, %v1444_v1, %v1440_v8  ;;  %v949_v37 = vpop.xlane.xlu0 %948  ;;  %v867_v1 = vmul.f32 %v739_v23, %v483_v29  ;;  %v725_v22 = vsub.f32 %v2868_v58, %v597_v52  ;;  %v470_v9 = vmin.f32 %v2909_v54, 1.0 }
  0xdf   :  { %v1454_v30 = vrot.slane %v951_v12, %v2594_v63  ;;  %v1449_v31 = vrot.slane %v949_v37, %v2602_v57  ;;  %v627_v45 = vmul.f32 0.5, %v499_v40  ;;  %v2932_v4 = vand.u32 2147483647, %v244_v53 }
  0xe0   :  { %v2934_v8 = vand.u32 2147483647, %v215_v6  ;;  %v485_v10 = vmin.f32 %v2923_v56, 1.0  ;;  %v2938_v29 = vand.u32 2147483647, %v230_v27  ;;  %v245_v58 = vsub.f32 %v2587_v60, %v2853_v13 }
  0xe1   :  { %v1450_v61 = vsel %vm1364_vm11, %v1449_v31, %v1445_v18  ;;  %1126 = vadd.xlane.f32.xlu0 %v880_v44  ;;  %1068 = vadd.xlane.f32.xlu1 %v851_v38  ;;  %v882_v38 = vmul.f32 %v754_v19, %v498_v7  ;;  %v853_v37 = vmul.f32 %v725_v22, %v469_v11  ;;  %v598_v19 = vmul.f32 0.5, %v470_v9 }
  0xe2   :  { %v955_v59 = vpop.xlane.xlu1 %954  ;;  %v1455_v26 = vsel %vm1371_vm12, %v1454_v30, %v1450_v61  ;;  %v953_v24 = vpop.xlane.xlu0 %952  ;;  %v231_v23 = vsub.f32 %v2509_v46, %v2916_v62  ;;  %v740_v11 = vsub.f32 %v2886_v34, %v612_v21  ;;  %v755_v31 = vsub.f32 %v2889_v3, %v627_v45 }
  0xe3   :  { %v1464_v55 = vrot.slane %v955_v59, %v2608_v42  ;;  %v1459_v44 = vrot.slane %v953_v24, %v2638_v5  ;;  %v500_v53 = vmin.f32 %v2932_v4, 1.0  ;;  %v471_v6 = vmin.f32 %v2934_v8, 1.0 }
  0xe4   :  { %v2964_v27 = vand.u32 2147483647, %v245_v58  ;;  %v2968_v34 = vand.u32 2147483647, %v231_v23  ;;  %v246_v3 = vsub.f32 %v2587_v60, %v2894_v49  ;;  %v883_v21 = vmul.f32 %v755_v31, %v499_v40 }
  0xe5   :  { %v1460_v48 = vsel %vm1378_vm13, %v1459_v44, %v1455_v26  ;;  %1098 = vadd.xlane.f32.xlu0 %v866_v15  ;;  %1128 = vadd.xlane.f32.xlu1 %v881_v36  ;;  %v216_v15 = vsub.f32 %v2468_v41, %v2946_v47  ;;  %v613_v36 = vmul.f32 0.5, %v485_v10  ;;  %v726_v45 = vsub.f32 %v2909_v54, %v598_v19 }
  0xe6   :  { %v1465_v7 = vsel %vm1385_vm14, %v1464_v55, %v1460_v48  ;;  %v959_v12 = vpop.xlane.xlu1 %958  ;;  %v957_v18 = vpop.xlane.xlu0 %956  ;;  %v628_v48 = vmul.f32 0.5, %v500_v53  ;;  %v599_v58 = vmul.f32 0.5, %v471_v6  ;;  %v487_v54 = vmin.f32 %v2968_v34, 1.0 }
  0xe7   :  { %v2954_v52 = vsel %vm1940_vm15, %v1465_v7, %v2783_v43  ;;  %v1473_v13 = vrot.slane %v959_v12, %v2474_v50  ;;  %v1469_v30 = vrot.slane %v957_v18, %v2434_v2  ;;  %v486_v43 = vmin.f32 %v2938_v29, 1.0 }
  0xe8   :  { %v2966_v24 = vand.u32 2147483647, %v216_v15  ;;  %v741_v7 = vsub.f32 %v2923_v56, %v613_v36  ;;  %v501_v12 = vmin.f32 %v2964_v27, 1.0  ;;  %v756_v31 = vsub.f32 %v2932_v4, %v628_v48 }
  0xe9   :  { %v1474_v61 = vsel %vm1287_vm0, %v1473_v13, %v1469_v30  ;;  %1070 = vadd.xlane.f32.xlu0 %v852_v39  ;;  %1100 = vadd.xlane.f32.xlu1 %v867_v1  ;;  %v868_v39 = vmul.f32 %v740_v11, %v484_v0  ;;  %v2977_v1 = vld [vmem:[%s3242_s1 + $0x70] sm:$0xff]  ;;  %v614_v0 = vmul.f32 0.5, %v486_v43  ;;  %v2990_v13 = vand.u32 2147483647, %v246_v3 }
  0xea   :  { %v963_v59 = vpop.xlane.xlu1 %962  ;;  %v961_v26 = vpop.xlane.xlu0 %960  ;;  %v217_v44 = vsub.f32 %v2468_v41, %v2977_v1  ;;  %v472_v40 = vmin.f32 %v2966_v24, 1.0  ;;  %v232_v30 = vsub.f32 %v2509_v46, %v2946_v47  ;;  %v854_v11 = vmul.f32 %v726_v45, %v470_v9 }
  0xeb   :  { %v1483_v22 = vrot.slane %v963_v59, %v2457_v25  ;;  %v1478_v55 = vrot.slane %v961_v26, %v2424_v33  ;;  %v727_v19 = vsub.f32 %v2934_v8, %v599_v58  ;;  %v869_v59 = vmul.f32 %v741_v7, %v485_v10 }
  0xec   :  { %v2994_v56 = vand.u32 2147483647, %v217_v44  ;;  %v742_v26 = vsub.f32 %v2938_v29, %v614_v0  ;;  %v629_v3 = vmul.f32 0.5, %v501_v12  ;;  %v600_v9 = vmul.f32 0.5, %v472_v40 }
  0xed   :  { %v1479_v49 = vsel %vm1294_vm1, %v1478_v55, %v1474_v61  ;;  %1130 = vadd.xlane.f32.xlu0 %v882_v38  ;;  %1072 = vadd.xlane.f32.xlu1 %v853_v37  ;;  %v247_v61 = vsub.f32 %v2587_v60, %v2916_v62  ;;  %v615_v45 = vmul.f32 0.5, %v487_v54  ;;  %v502_v4 = vmin.f32 %v2990_v13, 1.0 }
  0xee   :  { %v967_v18 = vpop.xlane.xlu1 %966  ;;  %v1484_v15 = vsel %vm1301_vm2, %v1483_v22, %v1479_v49  ;;  %v965_v23 = vpop.xlane.xlu0 %964  ;;  %v473_v48 = vmin.f32 %v2994_v56, 1.0  ;;  %v884_v10 = vmul.f32 %v756_v31, %v500_v53  ;;  %v3016_v49 = vld [vmem:[%s3242_s1 + $0x78] sm:$0xff]  ;;  %v233_v53 = vsub.f32 %v2509_v46, %v2977_v1 }
  0xef   :  { %v1493_v38 = vrot.slane %v967_v18, %v2479_v35  ;;  %v1488_v37 = vrot.slane %v965_v23, %v2482_v28  ;;  %v3011_v58 = vand.u32 2147483647, %v247_v61  ;;  %v218_v7 = vsub.f32 %v2468_v41, %v3016_v49 }
  0xf0   :  { %v757_v18 = vsub.f32 %v2964_v27, %v629_v3  ;;  %vm1942_vm15 = vcmask 1042434  }
  0xf1   :  { %v1489_v36 = vsel %vm1308_vm3, %v1488_v37, %v1484_v15  ;;  %1102 = vadd.xlane.f32.xlu0 %v868_v39  ;;  %1132 = vadd.xlane.f32.xlu1 %v883_v21  ;;  %v3009_v39 = vand.u32 2147483647, %v232_v30  ;;  %v855_v21 = vmul.f32 %v727_v19, %v471_v6  ;;  %v743_v37 = vsub.f32 %v2968_v34, %v615_v45 }
  0xf2   :  { %v971_v22 = vpop.xlane.xlu1 %970  ;;  %v1494_v55 = vsel %vm1315_vm4, %v1493_v38, %v1489_v36  ;;  %v969_v44 = vpop.xlane.xlu0 %968  ;;  %v728_v38 = vsub.f32 %v2966_v24, %v600_v9  ;;  %v630_v30 = vmul.f32 0.5, %v502_v4  ;;  %v503_v27 = vmin.f32 %v3011_v58, 1.0 }
  0xf3   :  { %v1503_v8 = vrot.slane %v971_v22, %v2512_v14  ;;  %v1498_v62 = vrot.slane %v969_v44, %v2525_v32  ;;  %v488_v19 = vmin.f32 %v3009_v39, 1.0  ;;  %v3031_v61 = vand.u32 2147483647, %v218_v7 }
  0xf4   :  { %v248_v36 = vsub.f32 %v2587_v60, %v2946_v47  ;;  %v234_v24 = vsub.f32 %v2509_v46, %v3016_v49  ;;  %v885_v3 = vmul.f32 %v757_v18, %v501_v12  ;;  %v3040_v22 = vand.u32 2147483647, %v233_v53 }
  0xf5   :  { %v1499_v0 = vsel %vm1322_vm5, %v1498_v62, %v1494_v55  ;;  %1074 = vadd.xlane.f32.xlu0 %v854_v11  ;;  %1104 = vadd.xlane.f32.xlu1 %v869_v59  ;;  %v601_v11 = vmul.f32 0.5, %v473_v48  ;;  %v870_v59 = vmul.f32 %v742_v26, %v486_v43  ;;  %v856_v45 = vmul.f32 %v728_v38, %v472_v40 }
  0xf6   :  { %v975_v6 = vpop.xlane.xlu1 %974  ;;  %v1504_v15 = vsel %vm1329_vm6, %v1503_v8, %v1499_v0  ;;  %v973_v23 = vpop.xlane.xlu0 %972  ;;  %v871_v8 = vmul.f32 %v743_v37, %v487_v54  ;;  %v758_v47 = vsub.f32 %v2990_v13, %v630_v30  ;;  %v631_v29 = vmul.f32 0.5, %v503_v27 }
  0xf7   :  { %v1513_v41 = vrot.slane %v975_v6, %v2539_v16  ;;  %v1508_v31 = vrot.slane %v973_v23, %v2545_v17  ;;  %v474_v43 = vmin.f32 %v3031_v61, 1.0  ;;  %v3048_v12 = vand.u32 2147483647, %v248_v36 }
  0xf8   :  { %v3050_v26 = vand.u32 2147483647, %v234_v24  ;;  %v489_v40 = vmin.f32 %v3040_v22, 1.0  ;;  %v249_v54 = vsub.f32 %v2587_v60, %v2977_v1  ;;  %v250_v13 = vsub.f32 %v2587_v60, %v3016_v49 }
  0xf9   :  { %v1509_v34 = vsel %vm1336_vm7, %v1508_v31, %v1504_v15  ;;  %1134 = vadd.xlane.f32.xlu0 %v884_v10  ;;  %1076 = vadd.xlane.f32.xlu1 %v855_v21  ;;  %v729_v10 = vsub.f32 %v2994_v56, %v601_v11  ;;  %v616_v21 = vmul.f32 0.5, %v488_v19  ;;  %v886_v53 = vmul.f32 %v758_v47, %v502_v4 }
  0xfa   :  { %v979_v55 = vpop.xlane.xlu1 %978  ;;  %v1514_v44 = vsel %vm1343_vm8, %v1513_v41, %v1509_v34  ;;  %v977_v9 = vpop.xlane.xlu0 %976  ;;  %v759_v37 = vsub.f32 %v3011_v58, %v631_v29  ;;  %v602_v30 = vmul.f32 0.5, %v474_v43  ;;  %v504_v1 = vmin.f32 %v3048_v12, 1.0 }
  0xfb   :  { %v1523_v46 = vrot.slane %v979_v55, %v2565_v51  ;;  %v1518_v62 = vrot.slane %v977_v9, %v2582_v20  ;;  %v857_v23 = vmul.f32 %v729_v10, %v473_v48  ;;  %v744_v38 = vsub.f32 %v3009_v39, %v616_v21 }
  0xfc   :  { %v490_v41 = vmin.f32 %v3050_v26, 1.0  ;;  %v617_v49 = vmul.f32 0.5, %v489_v40  ;;  %v377_v4 = vand.u32 2147483647, %v249_v54  ;;  %v378_v31 = vand.u32 2147483647, %v250_v13 }
  0xfd   :  { %v1519_v7 = vsel %vm1350_vm9, %v1518_v62, %v1514_v44  ;;  %1106 = vadd.xlane.f32.xlu0 %v870_v59  ;;  %1136 = vadd.xlane.f32.xlu1 %v885_v3  ;;  %v872_v24 = vmul.f32 %v744_v38, %v488_v19  ;;  %v887_v34 = vmul.f32 %v759_v37, %v503_v27  ;;  %v632_v3 = vmul.f32 0.5, %v504_v1 }
  0xfe   :  { %v983_v56 = vpop.xlane.xlu1 %982  ;;  %v1524_v0 = vsel %vm1357_vm10, %v1523_v46, %v1519_v7  ;;  %v981_v18 = vpop.xlane.xlu0 %980  ;;  %v730_v59 = vsub.f32 %v3031_v61, %v602_v30  ;;  %v618_v55 = vmul.f32 0.5, %v490_v41  ;;  %v745_v9 = vsub.f32 %v3040_v22, %v617_v49 }
  0xff   :  { %v1533_v6 = vrot.slane %v983_v56, %v2594_v63  ;;  %v1528_v15 = vrot.slane %v981_v18, %v2602_v57  ;;  %v760_v21 = vsub.f32 %v3048_v12, %v632_v3 }
 0x100   :  { %v858_v10 = vmul.f32 %v730_v59, %v474_v43  ;;  %v746_v29 = vsub.f32 %v3050_v26, %v618_v55  ;;  %v873_v7 = vmul.f32 %v745_v9, %v489_v40 }
 0x101   :  { %v1529_v60 = vsel %vm1364_vm11, %v1528_v15, %v1524_v0  ;;  %1078 = vadd.xlane.f32.xlu0 %v856_v45  ;;  %1108 = vadd.xlane.f32.xlu1 %v871_v8  ;;  %v505_v45 = vmin.f32 %v377_v4, 1.0  ;;  %v506_v8 = vmin.f32 %v378_v31, 1.0 }
 0x102   :  { %v987_v11 = vpop.xlane.xlu1 %986  ;;  %v1534_v36 = vsel %vm1371_vm12, %v1533_v6, %v1529_v60  ;;  %v985_v48 = vpop.xlane.xlu0 %984  ;;  %v874_v6 = vmul.f32 %v746_v29, %v490_v41 }
 0x103   :  { %v1543_v39 = vrot.slane %v987_v11, %v2608_v42  ;;  %v1538_v58 = vrot.slane %v985_v48, %v2638_v5  ;;  %v633_v54 = vmul.f32 0.5, %v505_v45  ;;  %v634_v13 = vmul.f32 0.5, %v506_v8 }
 0x105   :  { %v1539_v44 = vsel %vm1378_vm13, %v1538_v58, %v1534_v36  ;;  %1138 = vadd.xlane.f32.xlu0 %v886_v53  ;;  %1080 = vadd.xlane.f32.xlu1 %v857_v23  ;;  %v888_v53 = vmul.f32 %v760_v21, %v504_v1  ;;  %v761_v12 = vsub.f32 %v377_v4, %v633_v54 }
 0x106   :  { %v1544_v47 = vsel %vm1385_vm14, %v1543_v39, %v1539_v44  ;;  %v991_v46 = vpop.xlane.xlu1 %990  ;;  %v989_v62 = vpop.xlane.xlu0 %988  ;;  %v762_v26 = vsub.f32 %v378_v31, %v634_v13 }
 0x107   :  { %v3075_v19 = vsel %vm1942_vm15, %v1544_v47, %v2954_v52  ;;  %v1552_v27 = vrot.slane %v991_v46, %v2474_v50  ;;  %v1548_v61 = vrot.slane %v989_v62, %v2434_v2  ;;  %v889_v1 = vmul.f32 %v761_v12, %v505_v45 }
 0x108   :  { %v890_v41 = vmul.f32 %v762_v26, %v506_v8  ;;  %vm1944_vm15 = vcmask 1043459  }
 0x109   :  { %v1553_v22 = vsel %vm1287_vm0, %v1552_v27, %v1548_v61  ;;  %1110 = vadd.xlane.f32.xlu0 %v872_v24  ;;  %1140 = vadd.xlane.f32.xlu1 %v887_v34 }
 0x10a   :  { %v995_v56 = vpop.xlane.xlu1 %994  ;;  %v993_v0 = vpop.xlane.xlu0 %992 }
 0x10b   :  { %v1562_v52 = vrot.slane %v995_v56, %v2457_v25  ;;  %v1557_v18 = vrot.slane %v993_v0, %v2424_v33 }
 0x10d   :  { %v1558_v43 = vsel %vm1294_vm1, %v1557_v18, %v1553_v22  ;;  %1082 = vadd.xlane.f32.xlu0 %v858_v10  ;;  %1112 = vadd.xlane.f32.xlu1 %v873_v7 }
 0x10e   :  { %v999_v15 = vpop.xlane.xlu1 %998  ;;  %v1563_v23 = vsel %vm1301_vm2, %v1562_v52, %v1558_v43  ;;  %v997_v40 = vpop.xlane.xlu0 %996 }
 0x10f   :  { %v1572_v38 = vrot.slane %v999_v15, %v2479_v35  ;;  %v1567_v37 = vrot.slane %v997_v40, %v2482_v28 }
 0x111   :  { %v1568_v30 = vsel %vm1308_vm3, %v1567_v37, %v1563_v23  ;;  %1142 = vadd.xlane.f32.xlu0 %v888_v53  ;;  %1114 = vadd.xlane.f32.xlu1 %v874_v6 }
 0x112   :  { %v1003_v60 = vpop.xlane.xlu1 %1002  ;;  %v1573_v49 = vsel %vm1315_vm4, %v1572_v38, %v1568_v30  ;;  %v1001_v11 = vpop.xlane.xlu0 %1000 }
 0x113   :  { %v1582_v4 = vrot.slane %v1003_v60, %v2512_v14  ;;  %v1577_v31 = vrot.slane %v1001_v11, %v2525_v32 }
 0x115   :  { %v1578_v36 = vsel %vm1322_vm5, %v1577_v31, %v1573_v49  ;;  %1144 = vadd.xlane.f32.xlu0 %v889_v1  ;;  %1146 = vadd.xlane.f32.xlu1 %v890_v41 }
 0x116   :  { %v1007_v48 = vpop.xlane.xlu1 %1006  ;;  %v1583_v39 = vsel %vm1329_vm6, %v1582_v4, %v1578_v36  ;;  %v1005_v58 = vpop.xlane.xlu0 %1004 }
 0x117   :  { %v1592_v24 = vrot.slane %v1007_v48, %v2539_v16  ;;  %v1587_v34 = vrot.slane %v1005_v58, %v2545_v17 }
 0x119   :  { %v1588_v59 = vsel %vm1336_vm7, %v1587_v34, %v1583_v39 }
 0x11a   :  { %v1011_v3 = vpop.xlane.xlu1 %1010  ;;  %v1593_v55 = vsel %vm1343_vm8, %v1592_v24, %v1588_v59  ;;  %v1009_v44 = vpop.xlane.xlu0 %1008 }
 0x11b   :  { %v1602_v9 = vrot.slane %v1011_v3, %v2565_v51  ;;  %v1597_v45 = vrot.slane %v1009_v44, %v2582_v20 }
 0x11d   :  { %v1598_v8 = vsel %vm1350_vm9, %v1597_v45, %v1593_v55 }
 0x11e   :  { %v1015_v47 = vpop.xlane.xlu1 %1014  ;;  %v1603_v46 = vsel %vm1357_vm10, %v1602_v9, %v1598_v8  ;;  %v1013_v62 = vpop.xlane.xlu0 %1012 }
 0x11f   :  { %v1612_v27 = vrot.slane %v1015_v47, %v2594_v63  ;;  %v1607_v61 = vrot.slane %v1013_v62, %v2602_v57 }
 0x121   :  { %v1608_v10 = vsel %vm1364_vm11, %v1607_v61, %v1603_v46 }
 0x122   :  { %v1019_v21 = vpop.xlane.xlu1 %1018  ;;  %v1613_v29 = vsel %vm1371_vm12, %v1612_v27, %v1608_v10  ;;  %v1017_v22 = vpop.xlane.xlu0 %1016 }
 0x123   :  { %v1622_v7 = vrot.slane %v1019_v21, %v2608_v42  ;;  %v1617_v54 = vrot.slane %v1017_v22, %v2638_v5 }
 0x125   :  { %v1618_v13 = vsel %vm1378_vm13, %v1617_v54, %v1613_v29 }
 0x126   :  { %v1623_v56 = vsel %vm1385_vm14, %v1622_v7, %v1618_v13  ;;  %v1023_v0 = vpop.xlane.xlu1 %1022  ;;  %v1021_v52 = vpop.xlane.xlu0 %1020 }
 0x127   :  { %v1945_v18 = vsel %vm1944_vm15, %v1623_v56, %v3075_v19  ;;  %v1631_v53 = vrot.slane %v1023_v0, %v2474_v50  ;;  %v1627_v6 = vrot.slane %v1021_v52, %v2434_v2  ;;  %vm1946_vm15 = vcmask 1044484  }
 0x129   :  { %v1632_v43 = vsel %vm1287_vm0, %v1631_v53, %v1627_v6 }
 0x12a   :  { %v1027_v12 = vpop.xlane.xlu1 %1026  ;;  %v1025_v26 = vpop.xlane.xlu0 %1024 }
 0x12b   :  { %v1641_v15 = vrot.slane %v1027_v12, %v2457_v25  ;;  %v1636_v23 = vrot.slane %v1025_v26, %v2424_v33 }
 0x12d   :  { %v1637_v40 = vsel %vm1294_vm1, %v1636_v23, %v1632_v43 }
 0x12e   :  { %v1031_v38 = vpop.xlane.xlu1 %1030  ;;  %v1642_v37 = vsel %vm1301_vm2, %v1641_v15, %v1637_v40  ;;  %v1029_v30 = vpop.xlane.xlu0 %1028 }
 0x12f   :  { %v1651_v19 = vrot.slane %v1031_v38, %v2479_v35  ;;  %v1646_v1 = vrot.slane %v1029_v30, %v2482_v28 }
 0x131   :  { %v1647_v41 = vsel %vm1308_vm3, %v1646_v1, %v1642_v37 }
 0x132   :  { %v1035_v60 = vpop.xlane.xlu1 %1034  ;;  %v1652_v49 = vsel %vm1315_vm4, %v1651_v19, %v1647_v41  ;;  %v1033_v11 = vpop.xlane.xlu0 %1032 }
 0x133   :  { %v1661_v4 = vrot.slane %v1035_v60, %v2512_v14  ;;  %v1656_v31 = vrot.slane %v1033_v11, %v2525_v32 }
 0x135   :  { %v1657_v36 = vsel %vm1322_vm5, %v1656_v31, %v1652_v49 }
 0x136   :  { %v1039_v48 = vpop.xlane.xlu1 %1038  ;;  %v1662_v39 = vsel %vm1329_vm6, %v1661_v4, %v1657_v36  ;;  %v1037_v58 = vpop.xlane.xlu0 %1036 }
 0x137   :  { %v1671_v24 = vrot.slane %v1039_v48, %v2539_v16  ;;  %v1666_v34 = vrot.slane %v1037_v58, %v2545_v17 }
 0x139   :  { %v1667_v59 = vsel %vm1336_vm7, %v1666_v34, %v1662_v39 }
 0x13a   :  { %v1043_v3 = vpop.xlane.xlu1 %1042  ;;  %v1672_v55 = vsel %vm1343_vm8, %v1671_v24, %v1667_v59  ;;  %v1041_v44 = vpop.xlane.xlu0 %1040 }
 0x13b   :  { %v1681_v9 = vrot.slane %v1043_v3, %v2565_v51  ;;  %v1676_v45 = vrot.slane %v1041_v44, %v2582_v20 }
 0x13d   :  { %v1677_v8 = vsel %vm1350_vm9, %v1676_v45, %v1672_v55 }
 0x13e   :  { %v1047_v47 = vpop.xlane.xlu1 %1046  ;;  %v1682_v46 = vsel %vm1357_vm10, %v1681_v9, %v1677_v8  ;;  %v1045_v62 = vpop.xlane.xlu0 %1044 }
 0x13f   :  { %v1691_v27 = vrot.slane %v1047_v47, %v2594_v63  ;;  %v1686_v61 = vrot.slane %v1045_v62, %v2602_v57 }
 0x141   :  { %v1687_v10 = vsel %vm1364_vm11, %v1686_v61, %v1682_v46 }
 0x142   :  { %v1051_v21 = vpop.xlane.xlu1 %1050  ;;  %v1692_v29 = vsel %vm1371_vm12, %v1691_v27, %v1687_v10  ;;  %v1049_v22 = vpop.xlane.xlu0 %1048 }
 0x143   :  { %v1701_v7 = vrot.slane %v1051_v21, %v2608_v42  ;;  %v1696_v54 = vrot.slane %v1049_v22, %v2638_v5 }
 0x145   :  { %v1697_v13 = vsel %vm1378_vm13, %v1696_v54, %v1692_v29 }
 0x146   :  { %v1702_v56 = vsel %vm1385_vm14, %v1701_v7, %v1697_v13  ;;  %v1055_v0 = vpop.xlane.xlu1 %1054  ;;  %v1053_v52 = vpop.xlane.xlu0 %1052 }
 0x147   :  { %v1710_v53 = vrot.slane %v1055_v0, %v2474_v50  ;;  %v1706_v6 = vrot.slane %v1053_v52, %v2434_v2  ;;  %v3144_v43 = vsel %vm1946_vm15, %v1702_v56, %v1945_v18 }
 0x149   :  { %v1711_v12 = vsel %vm1287_vm0, %v1710_v53, %v1706_v6 }
 0x14a   :  { %v1085_v26 = vpop.xlane.xlu1 %1084  ;;  %v1057_v15 = vpop.xlane.xlu0 %1056 }
 0x14b   :  { %v1785_v23 = vrot.slane %v1085_v26, %v2434_v2  ;;  %v1715_v40 = vrot.slane %v1057_v15, %v2424_v33 }
 0x14d   :  { %v1716_v38 = vsel %vm1294_vm1, %v1715_v40, %v1711_v12 }
 0x14e   :  { %v1059_v37 = vpop.xlane.xlu1 %1058  ;;  %v1087_v30 = vpop.xlane.xlu0 %1086 }
 0x14f   :  { %v1720_v19 = vrot.slane %v1059_v37, %v2457_v25  ;;  %v1789_v1 = vrot.slane %v1087_v30, %v2474_v50 }
 0x151   :  { %v1721_v41 = vsel %vm1301_vm2, %v1720_v19, %v1716_v38  ;;  %v1790_v18 = vsel %vm1287_vm0, %v1789_v1, %v1785_v23 }
 0x152   :  { %v1089_v60 = vpop.xlane.xlu0 %1088  ;;  %v1117_v49 = vpop.xlane.xlu1 %1116 }
 0x153   :  { %v1794_v11 = vrot.slane %v1089_v60, %v2424_v33  ;;  %v1864_v4 = vrot.slane %v1117_v49, %v2434_v2 }
 0x155   :  { %v1795_v31 = vsel %vm1294_vm1, %v1794_v11, %v1790_v18 }
 0x156   :  { %v1119_v36 = vpop.xlane.xlu0 %1118  ;;  %v1061_v48 = vpop.xlane.xlu1 %1060 }
 0x157   :  { %v1868_v39 = vrot.slane %v1119_v36, %v2474_v50  ;;  %v1725_v58 = vrot.slane %v1061_v48, %v2482_v28 }
 0x159   :  { %v1869_v24 = vsel %vm1287_vm0, %v1868_v39, %v1864_v4  ;;  %v1726_v34 = vsel %vm1308_vm3, %v1725_v58, %v1721_v41  ;;  %vm1948_vm0 = vcmask 1045509  }
 0x15a   :  { %v1091_v59 = vpop.xlane.xlu0 %1090  ;;  %v1121_v3 = vpop.xlane.xlu1 %1120 }
 0x15b   :  { %v1799_v55 = vrot.slane %v1091_v59, %v2457_v25  ;;  %v1873_v44 = vrot.slane %v1121_v3, %v2424_v33 }
 0x15d   :  { %v1800_v2 = vsel %vm1301_vm2, %v1799_v55, %v1795_v31  ;;  %v1874_v9 = vsel %vm1294_vm1, %v1873_v44, %v1869_v24  ;;  %vm1950_vm1 = vcmask 1046534  }
 0x15e   :  { %v1063_v45 = vpop.xlane.xlu0 %1062  ;;  %v1093_v8 = vpop.xlane.xlu1 %1092 }
 0x15f   :  { %v1730_v50 = vrot.slane %v1063_v45, %v2479_v35  ;;  %v1804_v47 = vrot.slane %v1093_v8, %v2482_v28 }
 0x161   :  { %v1731_v46 = vsel %vm1315_vm4, %v1730_v50, %v1726_v34  ;;  %v1805_v62 = vsel %vm1308_vm3, %v1804_v47, %v1800_v2 }
 0x162   :  { %v1123_v27 = vpop.xlane.xlu0 %1122  ;;  %v1065_v61 = vpop.xlane.xlu1 %1064 }
 0x163   :  { %v1878_v10 = vrot.slane %v1123_v27, %v2457_v25  ;;  %v1735_v33 = vrot.slane %v1065_v61, %v2525_v32 }
 0x165   :  { %v1879_v21 = vsel %vm1301_vm2, %v1878_v10, %v1874_v9  ;;  %v1736_v29 = vsel %vm1322_vm5, %v1735_v33, %v1731_v46  ;;  %vm1952_vm2 = vcmask 1047559  }
 0x166   :  { %v1095_v22 = vpop.xlane.xlu0 %1094  ;;  %v1125_v7 = vpop.xlane.xlu1 %1124 }
 0x167   :  { %v1809_v54 = vrot.slane %v1095_v22, %v2479_v35  ;;  %v1883_v13 = vrot.slane %v1125_v7, %v2482_v28 }
 0x169   :  { %v1810_v56 = vsel %vm1315_vm4, %v1809_v54, %v1805_v62  ;;  %v1884_v0 = vsel %vm1308_vm3, %v1883_v13, %v1879_v21 }
 0x16a   :  { %v1067_v52 = vpop.xlane.xlu0 %1066  ;;  %v1097_v53 = vpop.xlane.xlu1 %1096 }
 0x16b   :  { %v1740_v25 = vrot.slane %v1067_v52, %v2512_v14  ;;  %v1814_v6 = vrot.slane %v1097_v53, %v2525_v32 }
 0x16d   :  { %v1741_v12 = vsel %vm1329_vm6, %v1740_v25, %v1736_v29  ;;  %v1815_v26 = vsel %vm1322_vm5, %v1814_v6, %v1810_v56 }
 0x16e   :  { %v1127_v15 = vpop.xlane.xlu0 %1126  ;;  %v1069_v23 = vpop.xlane.xlu1 %1068 }
 0x16f   :  { %v1888_v40 = vrot.slane %v1127_v15, %v2479_v35  ;;  %v1745_v28 = vrot.slane %v1069_v23, %v2545_v17 }
 0x171   :  { %v1889_v38 = vsel %vm1315_vm4, %v1888_v40, %v1884_v0  ;;  %v1746_v37 = vsel %vm1336_vm7, %v1745_v28, %v1741_v12 }
 0x172   :  { %v1099_v30 = vpop.xlane.xlu0 %1098  ;;  %v1129_v19 = vpop.xlane.xlu1 %1128 }
 0x173   :  { %v1819_v1 = vrot.slane %v1099_v30, %v2512_v14  ;;  %v1893_v41 = vrot.slane %v1129_v19, %v2525_v32 }
 0x175   :  { %v1820_v18 = vsel %vm1329_vm6, %v1819_v1, %v1815_v26  ;;  %v1894_v60 = vsel %vm1322_vm5, %v1893_v41, %v1889_v38 }
 0x176   :  { %v1071_v49 = vpop.xlane.xlu0 %1070  ;;  %v1101_v11 = vpop.xlane.xlu1 %1100 }
 0x177   :  { %v1750_v35 = vrot.slane %v1071_v49, %v2539_v16  ;;  %v1824_v4 = vrot.slane %v1101_v11, %v2545_v17 }
 0x179   :  { %v1751_v31 = vsel %vm1343_vm8, %v1750_v35, %v1746_v37  ;;  %v1825_v36 = vsel %vm1336_vm7, %v1824_v4, %v1820_v18 }
 0x17a   :  { %v1131_v48 = vpop.xlane.xlu0 %1130  ;;  %v1073_v39 = vpop.xlane.xlu1 %1072 }
 0x17b   :  { %v1898_v58 = vrot.slane %v1131_v48, %v2512_v14  ;;  %v1755_v32 = vrot.slane %v1073_v39, %v2582_v20 }
 0x17d   :  { %v1899_v24 = vsel %vm1329_vm6, %v1898_v58, %v1894_v60  ;;  %v1756_v34 = vsel %vm1350_vm9, %v1755_v32, %v1751_v31 }
 0x17e   :  { %v1103_v59 = vpop.xlane.xlu0 %1102  ;;  %v1133_v3 = vpop.xlane.xlu1 %1132 }
 0x17f   :  { %v1829_v55 = vrot.slane %v1103_v59, %v2539_v16  ;;  %v1903_v44 = vrot.slane %v1133_v3, %v2545_v17 }
 0x181   :  { %v1830_v2 = vsel %vm1343_vm8, %v1829_v55, %v1825_v36  ;;  %v1904_v9 = vsel %vm1336_vm7, %v1903_v44, %v1899_v24 }
 0x182   :  { %v1075_v45 = vpop.xlane.xlu0 %1074  ;;  %v1105_v8 = vpop.xlane.xlu1 %1104 }
 0x183   :  { %v1760_v14 = vrot.slane %v1075_v45, %v2565_v51  ;;  %v1834_v50 = vrot.slane %v1105_v8, %v2582_v20 }
 0x185   :  { %v1761_v47 = vsel %vm1357_vm10, %v1760_v14, %v1756_v34  ;;  %v1835_v46 = vsel %vm1350_vm9, %v1834_v50, %v1830_v2 }
 0x186   :  { %v1135_v62 = vpop.xlane.xlu0 %1134  ;;  %v1077_v27 = vpop.xlane.xlu1 %1076 }
 0x187   :  { %v1908_v61 = vrot.slane %v1135_v62, %v2539_v16  ;;  %v1765_v17 = vrot.slane %v1077_v27, %v2602_v57 }
 0x189   :  { %v1909_v10 = vsel %vm1343_vm8, %v1908_v61, %v1904_v9  ;;  %v1766_v33 = vsel %vm1364_vm11, %v1765_v17, %v1761_v47 }
 0x18a   :  { %v1107_v21 = vpop.xlane.xlu0 %1106  ;;  %v1137_v29 = vpop.xlane.xlu1 %1136 }
 0x18b   :  { %v1839_v22 = vrot.slane %v1107_v21, %v2565_v51  ;;  %v1913_v7 = vrot.slane %v1137_v29, %v2582_v20 }
 0x18d   :  { %v1840_v54 = vsel %vm1357_vm10, %v1839_v22, %v1835_v46  ;;  %v1914_v13 = vsel %vm1350_vm9, %v1913_v7, %v1909_v10 }
 0x18e   :  { %v1079_v56 = vpop.xlane.xlu0 %1078  ;;  %v1109_v0 = vpop.xlane.xlu1 %1108 }
 0x18f   :  { %v1770_v16 = vrot.slane %v1079_v56, %v2594_v63  ;;  %v1844_v52 = vrot.slane %v1109_v0, %v2602_v57 }
 0x191   :  { %v1771_v53 = vsel %vm1371_vm12, %v1770_v16, %v1766_v33  ;;  %v1845_v25 = vsel %vm1364_vm11, %v1844_v52, %v1840_v54 }
 0x192   :  { %v1139_v6 = vpop.xlane.xlu0 %1138  ;;  %v1081_v12 = vpop.xlane.xlu1 %1080 }
 0x193   :  { %v1918_v26 = vrot.slane %v1139_v6, %v2565_v51  ;;  %v1775_v20 = vrot.slane %v1081_v12, %v2638_v5 }
 0x195   :  { %v1919_v15 = vsel %vm1357_vm10, %v1918_v26, %v1914_v13  ;;  %v1776_v23 = vsel %vm1378_vm13, %v1775_v20, %v1771_v53 }
 0x196   :  { %v1111_v40 = vpop.xlane.xlu0 %1110  ;;  %v1141_v28 = vpop.xlane.xlu1 %1140 }
 0x197   :  { %v1849_v38 = vrot.slane %v1111_v40, %v2594_v63  ;;  %v1923_v37 = vrot.slane %v1141_v28, %v2602_v57 }
 0x199   :  { %v1850_v30 = vsel %vm1371_vm12, %v1849_v38, %v1845_v25  ;;  %v1924_v19 = vsel %vm1364_vm11, %v1923_v37, %v1919_v15 }
 0x19a   :  { %v1083_v1 = vpop.xlane.xlu0 %1082  ;;  %v1113_v41 = vpop.xlane.xlu1 %1112 }
 0x19b   :  { %v1780_v51 = vrot.slane %v1083_v1, %v2608_v42  ;;  %v1854_v18 = vrot.slane %v1113_v41, %v2638_v5 }
 0x19d   :  { %v1781_v60 = vsel %vm1385_vm14, %v1780_v51, %v1776_v23  ;;  %v1855_v49 = vsel %vm1378_vm13, %v1854_v18, %v1850_v30 }
 0x19e   :  { %v1949_v11 = vsel %vm1948_vm0, %v1781_v60, %v3144_v43  ;;  %v1143_v35 = vpop.xlane.xlu0 %1142  ;;  %v1115_v4 = vpop.xlane.xlu1 %1114 }
 0x19f   :  { %v1928_v57 = vrot.slane %v1143_v35, %v2594_v63  ;;  %v1859_v31 = vrot.slane %v1115_v4, %v2608_v42 }
 0x1a1   :  { %v1929_v36 = vsel %vm1371_vm12, %v1928_v57, %v1924_v19  ;;  %v1860_v48 = vsel %vm1385_vm14, %v1859_v31, %v1855_v49 }
 0x1a2   :  { %v1951_v39 = vsel %vm1950_vm1, %v1860_v48, %v1949_v11  ;;  %v1145_v58 = vpop.xlane.xlu0 %1144  ;;  %v1147_v32 = vpop.xlane.xlu1 %1146 }
 0x1a3   :  { %v1933_v24 = vrot.slane %v1145_v58, %v2638_v5  ;;  %v1938_v34 = vrot.slane %v1147_v32, %v2608_v42 }
 0x1a5   :  { %v1934_v43 = vsel %vm1378_vm13, %v1933_v24, %v1929_v36 }
 0x1a6   :  { %v1939_v59 = vsel %vm1385_vm14, %v1938_v34, %v1934_v43 }
 0x1a7   :  { %v1953_v63 = vsel %vm1952_vm2, %v1939_v59, %v1951_v39 }
 0x1a8   :  { %v1961_v3 = vmul.f32 0.0625, %v1953_v63 }
 0x1aa   :  { %1962 = vst [vmem:[%s3243_s2] sm:$0xff] %v1961_v3 }

</bundles_post_ra>
